<compile_context>
chip_gen: v7x
topology: tpu7x:2x2x1
jax: 0.10.0
libtpu: 0.0.40
codegen_flags: <defaults>
</compile_context>

<pallas_src>
import jax
import jax.numpy as jnp
from jax import lax
from jax.experimental import pallas as pl
from jax.experimental.pallas import tpu as pltpu


def _fused_upsample_conv_kernel(x_ref, w_ref, b_ref, o_ref):
    """One (batch, row-tile) step of conv3x3(nearest_upsample_2x(x)).

    x_ref: (1, 1, TH+2, W+2, C)  zero-padded source-resolution halo tile (NHWC)
    w_ref: (16, C, C)            parity-combined 2x2 effective kernels,
                                 index = ((ph*2 + pw)*2 + dh)*2 + dw
    b_ref: (1, C)                bias
    o_ref: (1, 1, 4, TH, W, C)   parity-separated output tile:
                                 o[..., 2*ph+pw, ih, iw, :] = out[2*(i0+ih)+ph, 2*iw+pw, :]
    """
    TH = o_ref.shape[3]
    W = o_ref.shape[4]
    C = o_ref.shape[5]
    bias = b_ref[0]  # (C,)

    for ph in range(2):
        for pw in range(2):
            acc = jnp.zeros((TH, W, C), jnp.float32)
            for dh in range(2):
                for dw in range(2):
                    # Shifted source window, sliced straight from the Ref
                    # (static offsets 0/1/2 -> plain strided vector loads).
                    patch = x_ref[0, 0,
                                  ph + dh: ph + dh + TH,
                                  pw + dw: pw + dw + W, :]
                    tap = w_ref[((ph * 2 + pw) * 2 + dh) * 2 + dw]  # (C, C)
                    # (TH*W, C) x (C, C) contraction with f32 accumulation.
                    # For production C (multiple of 128/256, optionally bf16
                    # inputs) this maps well onto the MXU; for the tiny C=4
                    # unit test the matmul is small either way.
                    acc = acc + jnp.einsum(
                        "hwc,cd->hwd", patch, tap,
                        preferred_element_type=jnp.float32)
            o_ref[0, 0, 2 * ph + pw] = (acc + bias[None, None, :]).astype(o_ref.dtype)


def _pick_row_tile(h, w, c, itemsize, max_rows=8, budget_bytes=2 * 1024 * 1024):
    """Largest divisor of h (<= max_rows) whose output row-tile fits the budget."""
    per_src_row = 4 * w * c * itemsize  # bytes of output produced per source row
    rows = int(max(1, min(h, max_rows, budget_bytes // max(1, per_src_row))))
    for t in range(rows, 0, -1):
        if h % t == 0:
            return t
    return 1


def upsample_forward(x_nchw, w_hwio, bias):
    """Equivalent of Upsample.forward: conv3x3(nearest_upsample_2x(x)), NCHW in/out."""
    N, C, H, W = x_nchw.shape
    Hp, Wp = 2 * H, 2 * W
    itemsize = jnp.dtype(x_nchw.dtype).itemsize

    TH = _pick_row_tile(H, W, C, itemsize)
    nH = H // TH

    # ---- Glue at ORIGINAL resolution (the 2x-upsampled tensor is never built) ----
    x_nhwc = jnp.transpose(x_nchw, (0, 2, 3, 1))                      # (N, H, W, C)
    x_pad = jnp.pad(x_nhwc, ((0, 0), (1, 1), (1, 1), (0, 0)))         # (N, H+2, W+2, C)
    # Overlapping row tiles (1-source-row halo each side) so plain Blocked
    # BlockSpecs are exact; duplication is only 2 rows per TH source rows.
    x_tiles = jnp.stack(
        [x_pad[:, i * TH: i * TH + TH + 2] for i in range(nH)], axis=1)  # (N,nH,TH+2,W+2,C)

    # Fold "nearest 2x then 3x3 conv" into 4 parity-dependent 2x2 kernels:
    #   out[2i+ph, 2j+pw] = sum_{dh,dw} W_eff[ph,pw,dh,dw] . x_pad[i+ph+dh, j+pw+dw]
    R = jnp.array([[[1., 0., 0.], [0., 1., 1.]],
                   [[1., 1., 0.], [0., 0., 1.]]], dtype=w_hwio.dtype)    # (parity, d, k)
    w_eff = jnp.einsum("pak,qbl,klio->pqabio", R, R, w_hwio)             # (2,2,2,2,C,C)
    w_eff = w_eff.reshape(16, C, C)
    bias2d = bias.reshape(1, C)

    # VMEM / cost bookkeeping.
    x_tile_bytes = (TH + 2) * (W + 2) * C * itemsize
    out_tile_bytes = 4 * TH * W * C * itemsize
    acc_bytes = TH * W * C * 4
    per_step = 2 * (x_tile_bytes + out_tile_bytes) + 16 * C * C * itemsize + acc_bytes
    vmem_limit = int(min(48 * 2**20, max(32 * 2**20, 4 * per_step)))

    cost = pl.CostEstimate(
        flops=2 * 4 * N * Hp * Wp * C * C,          # 4 effective taps per output element
        transcendentals=0,
        bytes_accessed=int(x_tiles.size * itemsize + 16 * C * C * itemsize
                           + N * nH * 4 * TH * W * C * itemsize),
    )

    ker_out = pl.pallas_call(
        _fused_upsample_conv_kernel,
        out_shape=jax.ShapeDtypeStruct((N, nH, 4, TH, W, C), x_nchw.dtype),
        grid=(N, nH),
        in_specs=[
            pl.BlockSpec((1, 1, TH + 2, W + 2, C), lambda n, h: (n, h, 0, 0, 0)),
            pl.BlockSpec((16, C, C), lambda n, h: (0, 0, 0)),
            pl.BlockSpec((1, C), lambda n, h: (0, 0)),
        ],
        out_specs=pl.BlockSpec((1, 1, 4, TH, W, C), lambda n, h: (n, h, 0, 0, 0, 0)),
        compiler_params=pltpu.CompilerParams(
            dimension_semantics=("parallel", "parallel"),
            vmem_limit_bytes=vmem_limit),
        cost_estimate=cost,
    )(x_tiles, w_eff, bias2d)

    # Single output rearrangement: un-interleave the parities AND land in NCHW.
    out = ker_out.reshape(N, nH, 2, 2, TH, W, C)
    out = out.transpose(0, 6, 1, 4, 2, 5, 3)        # (N, C, nH, ih, ph, iw, pw)
    return out.reshape(N, C, Hp, Wp)


if __name__ == "__main__":
    key = jax.random.PRNGKey(0)
    kx, kw, kb = jax.random.split(key, 3)

    # Small shapes consistent with the module: dim=4 channels, 16x16 spatial.
    N, C, H, W = 2, 4, 16, 16
    x = jax.random.normal(kx, (N, C, H, W), jnp.float32)

    # Deterministic Conv2d(dim, dim, 3) params (PyTorch-style uniform bounds),
    # stored directly in HWIO layout.
    fan_in = C * 3 * 3
    bound = 1.0 / (fan_in ** 0.5)
    w_hwio = jax.random.uniform(kw, (3, 3, C, C), jnp.float32, -bound, bound)
    bias = jax.random.uniform(kb, (C,), jnp.float32, -bound, bound)

    out = upsample_forward(x, w_hwio, bias)
    out = jax.block_until_ready(out)
    assert out.shape == (N, C, 2 * H, 2 * W), out.shape

    # Pure-JAX reference for correctness (explicit upsample + conv).
    x_nhwc = jnp.transpose(x, (0, 2, 3, 1))
    x_up = jnp.repeat(jnp.repeat(x_nhwc, 2, axis=1), 2, axis=2)
    ref = lax.conv_general_dilated(
        x_up, w_hwio, window_strides=(1, 1), padding="SAME",
        dimension_numbers=("NHWC", "HWIO", "NHWC")) + bias
    ref = jnp.transpose(ref, (0, 3, 1, 2))
    assert jnp.allclose(out, ref, atol=1e-5, rtol=1e-5), "mismatch vs reference"

    print("KERNEL_OK")
</pallas_src>

<mosaic_0001>
module attributes {stable_mosaic.version = 11 : i64} {
  func.func @_fused_upsample_conv_kernel(%arg0: i32, %arg1: i32, %arg2: memref<1x1x10x18x4xf32, #tpu.memory_space<vmem>>, %arg3: memref<16x4x4xf32, #tpu.memory_space<vmem>>, %arg4: memref<1x4xf32, #tpu.memory_space<vmem>>, %arg5: memref<1x1x4x8x16x4xf32, #tpu.memory_space<vmem>>) attributes {dimension_semantics = [#tpu.dimension_semantics<parallel>, #tpu.dimension_semantics<parallel>], iteration_bounds = array<i64: 2, 2>, scalar_prefetch = 0 : i64, scratch_operands = 0 : i64, tpu.core_type = #tpu.core_type<tc>, window_params = [{transform_indices = @transform_0, window_bounds = array<i64: 1, 1, 10, 18, 4>}, {pipeline_mode = #tpu.pipeline_mode<synchronous>, transform_indices = @transform_1, window_bounds = array<i64: 16, 4, 4>}, {pipeline_mode = #tpu.pipeline_mode<synchronous>, transform_indices = @transform_2, window_bounds = array<i64: 1, 4>}, {transform_indices = @transform_3, window_bounds = array<i64: 1, 1, 4, 8, 16, 4>}]} {
    %c0 = arith.constant 0 : index
    %c0_0 = arith.constant 0 : index
    %0 = vector.load %arg4[%c0, %c0_0] : memref<1x4xf32, #tpu.memory_space<vmem>>, vector<1x4xf32>
    %1 = vector.shape_cast %0 : vector<1x4xf32> to vector<4xf32>
    %cst = arith.constant 0.000000e+00 : f32
    %2 = vector.broadcast %cst : f32 to vector<8x16x4xf32>
    %c0_1 = arith.constant 0 : index
    %c0_2 = arith.constant 0 : index
    %c0_3 = arith.constant 0 : index
    %c0_4 = arith.constant 0 : index
    %c0_5 = arith.constant 0 : index
    %3 = vector.load %arg2[%c0_1, %c0_2, %c0_3, %c0_4, %c0_5] : memref<1x1x10x18x4xf32, #tpu.memory_space<vmem>>, vector<1x1x8x16x4xf32>
    %4 = vector.shape_cast %3 : vector<1x1x8x16x4xf32> to vector<8x16x4xf32>
    %c0_6 = arith.constant 0 : index
    %c0_7 = arith.constant 0 : index
    %c0_8 = arith.constant 0 : index
    %5 = vector.load %arg3[%c0_6, %c0_7, %c0_8] : memref<16x4x4xf32, #tpu.memory_space<vmem>>, vector<1x4x4xf32>
    %6 = vector.shape_cast %5 : vector<1x4x4xf32> to vector<4x4xf32>
    "tpu.trace_start"() <{level = 10 : i32, message = "hwc,cd->hwd"}> : () -> ()
    %cst_9 = arith.constant dense<0.000000e+00> : vector<8x16x4xf32>
    %7 = tpu.matmul %4, %6, %cst_9 {dimension_numbers = #tpu.dot_dimension_numbers<[2], [0], [0, 1], [1], [0, 0, 0, 1, 1, 1], [], []>} : vector<8x16x4xf32>, vector<4x4xf32>, vector<8x16x4xf32> -> vector<8x16x4xf32>
    "tpu.trace_stop"() : () -> ()
    %8 = arith.addf %2, %7 : vector<8x16x4xf32>
    %c0_10 = arith.constant 0 : index
    %c0_11 = arith.constant 0 : index
    %c0_12 = arith.constant 0 : index
    %c1 = arith.constant 1 : index
    %c0_13 = arith.constant 0 : index
    %9 = vector.load %arg2[%c0_10, %c0_11, %c0_12, %c1, %c0_13] : memref<1x1x10x18x4xf32, #tpu.memory_space<vmem>>, vector<1x1x8x16x4xf32>
    %10 = vector.shape_cast %9 : vector<1x1x8x16x4xf32> to vector<8x16x4xf32>
    %c1_14 = arith.constant 1 : index
    %c0_15 = arith.constant 0 : index
    %c0_16 = arith.constant 0 : index
    %11 = vector.load %arg3[%c1_14, %c0_15, %c0_16] : memref<16x4x4xf32, #tpu.memory_space<vmem>>, vector<1x4x4xf32>
    %12 = vector.shape_cast %11 : vector<1x4x4xf32> to vector<4x4xf32>
    "tpu.trace_start"() <{level = 10 : i32, message = "hwc,cd->hwd"}> : () -> ()
    %cst_17 = arith.constant dense<0.000000e+00> : vector<8x16x4xf32>
    %13 = tpu.matmul %10, %12, %cst_17 {dimension_numbers = #tpu.dot_dimension_numbers<[2], [0], [0, 1], [1], [0, 0, 0, 1, 1, 1], [], []>} : vector<8x16x4xf32>, vector<4x4xf32>, vector<8x16x4xf32> -> vector<8x16x4xf32>
    "tpu.trace_stop"() : () -> ()
    %14 = arith.addf %8, %13 : vector<8x16x4xf32>
    %c0_18 = arith.constant 0 : index
    %c0_19 = arith.constant 0 : index
    %c1_20 = arith.constant 1 : index
    %c0_21 = arith.constant 0 : index
    %c0_22 = arith.constant 0 : index
    %15 = vector.load %arg2[%c0_18, %c0_19, %c1_20, %c0_21, %c0_22] : memref<1x1x10x18x4xf32, #tpu.memory_space<vmem>>, vector<1x1x8x16x4xf32>
    %16 = vector.shape_cast %15 : vector<1x1x8x16x4xf32> to vector<8x16x4xf32>
    %c2 = arith.constant 2 : index
    %c0_23 = arith.constant 0 : index
    %c0_24 = arith.constant 0 : index
    %17 = vector.load %arg3[%c2, %c0_23, %c0_24] : memref<16x4x4xf32, #tpu.memory_space<vmem>>, vector<1x4x4xf32>
    %18 = vector.shape_cast %17 : vector<1x4x4xf32> to vector<4x4xf32>
    "tpu.trace_start"() <{level = 10 : i32, message = "hwc,cd->hwd"}> : () -> ()
    %cst_25 = arith.constant dense<0.000000e+00> : vector<8x16x4xf32>
    %19 = tpu.matmul %16, %18, %cst_25 {dimension_numbers = #tpu.dot_dimension_numbers<[2], [0], [0, 1], [1], [0, 0, 0, 1, 1, 1], [], []>} : vector<8x16x4xf32>, vector<4x4xf32>, vector<8x16x4xf32> -> vector<8x16x4xf32>
    "tpu.trace_stop"() : () -> ()
    %20 = arith.addf %14, %19 : vector<8x16x4xf32>
    %c0_26 = arith.constant 0 : index
    %c0_27 = arith.constant 0 : index
    %c1_28 = arith.constant 1 : index
    %c1_29 = arith.constant 1 : index
    %c0_30 = arith.constant 0 : index
    %21 = vector.load %arg2[%c0_26, %c0_27, %c1_28, %c1_29, %c0_30] : memref<1x1x10x18x4xf32, #tpu.memory_space<vmem>>, vector<1x1x8x16x4xf32>
    %22 = vector.shape_cast %21 : vector<1x1x8x16x4xf32> to vector<8x16x4xf32>
    %c3 = arith.constant 3 : index
    %c0_31 = arith.constant 0 : index
    %c0_32 = arith.constant 0 : index
    %23 = vector.load %arg3[%c3, %c0_31, %c0_32] : memref<16x4x4xf32, #tpu.memory_space<vmem>>, vector<1x4x4xf32>
    %24 = vector.shape_cast %23 : vector<1x4x4xf32> to vector<4x4xf32>
    "tpu.trace_start"() <{level = 10 : i32, message = "hwc,cd->hwd"}> : () -> ()
    %cst_33 = arith.constant dense<0.000000e+00> : vector<8x16x4xf32>
    %25 = tpu.matmul %22, %24, %cst_33 {dimension_numbers = #tpu.dot_dimension_numbers<[2], [0], [0, 1], [1], [0, 0, 0, 1, 1, 1], [], []>} : vector<8x16x4xf32>, vector<4x4xf32>, vector<8x16x4xf32> -> vector<8x16x4xf32>
    "tpu.trace_stop"() : () -> ()
    %26 = arith.addf %20, %25 : vector<8x16x4xf32>
    %27 = vector.shape_cast %1 : vector<4xf32> to vector<1x1x4xf32>
    %28 = vector.broadcast %27 : vector<1x1x4xf32> to vector<8x16x4xf32>
    %29 = arith.addf %26, %28 : vector<8x16x4xf32>
    %c0_34 = arith.constant 0 : index
    %c0_35 = arith.constant 0 : index
    %c0_36 = arith.constant 0 : index
    %c0_37 = arith.constant 0 : index
    %c0_38 = arith.constant 0 : index
    %c0_39 = arith.constant 0 : index
    %30 = vector.load %arg5[%c0_34, %c0_35, %c0_36, %c0_37, %c0_38, %c0_39] : memref<1x1x4x8x16x4xf32, #tpu.memory_space<vmem>>, vector<1x1x1x8x16x4xf32>
    %31 = vector.shape_cast %30 : vector<1x1x1x8x16x4xf32> to vector<8x16x4xf32>
    %32 = vector.shape_cast %29 : vector<8x16x4xf32> to vector<1x1x1x8x16x4xf32>
    tpu.vector_store %arg5[%c0_34, %c0_35, %c0_36, %c0_37, %c0_38, %c0_39], %32 {strides = array<i32>} : memref<1x1x4x8x16x4xf32, #tpu.memory_space<vmem>>, vector<1x1x1x8x16x4xf32>,
    %cst_40 = arith.constant 0.000000e+00 : f32
    %33 = vector.broadcast %cst_40 : f32 to vector<8x16x4xf32>
    %c0_41 = arith.constant 0 : index
    %c0_42 = arith.constant 0 : index
    %c0_43 = arith.constant 0 : index
    %c1_44 = arith.constant 1 : index
    %c0_45 = arith.constant 0 : index
    %34 = vector.load %arg2[%c0_41, %c0_42, %c0_43, %c1_44, %c0_45] : memref<1x1x10x18x4xf32, #tpu.memory_space<vmem>>, vector<1x1x8x16x4xf32>
    %35 = vector.shape_cast %34 : vector<1x1x8x16x4xf32> to vector<8x16x4xf32>
    %c4 = arith.constant 4 : index
    %c0_46 = arith.constant 0 : index
    %c0_47 = arith.constant 0 : index
    %36 = vector.load %arg3[%c4, %c0_46, %c0_47] : memref<16x4x4xf32, #tpu.memory_space<vmem>>, vector<1x4x4xf32>
    %37 = vector.shape_cast %36 : vector<1x4x4xf32> to vector<4x4xf32>
    "tpu.trace_start"() <{level = 10 : i32, message = "hwc,cd->hwd"}> : () -> ()
    %cst_48 = arith.constant dense<0.000000e+00> : vector<8x16x4xf32>
    %38 = tpu.matmul %35, %37, %cst_48 {dimension_numbers = #tpu.dot_dimension_numbers<[2], [0], [0, 1], [1], [0, 0, 0, 1, 1, 1], [], []>} : vector<8x16x4xf32>, vector<4x4xf32>, vector<8x16x4xf32> -> vector<8x16x4xf32>
    "tpu.trace_stop"() : () -> ()
    %39 = arith.addf %33, %38 : vector<8x16x4xf32>
    %c0_49 = arith.constant 0 : index
    %c0_50 = arith.constant 0 : index
    %c0_51 = arith.constant 0 : index
    %c2_52 = arith.constant 2 : index
    %c0_53 = arith.constant 0 : index
    %40 = vector.load %arg2[%c0_49, %c0_50, %c0_51, %c2_52, %c0_53] : memref<1x1x10x18x4xf32, #tpu.memory_space<vmem>>, vector<1x1x8x16x4xf32>
    %41 = vector.shape_cast %40 : vector<1x1x8x16x4xf32> to vector<8x16x4xf32>
    %c5 = arith.constant 5 : index
    %c0_54 = arith.constant 0 : index
    %c0_55 = arith.constant 0 : index
    %42 = vector.load %arg3[%c5, %c0_54, %c0_55] : memref<16x4x4xf32, #tpu.memory_space<vmem>>, vector<1x4x4xf32>
    %43 = vector.shape_cast %42 : vector<1x4x4xf32> to vector<4x4xf32>
    "tpu.trace_start"() <{level = 10 : i32, message = "hwc,cd->hwd"}> : () -> ()
    %cst_56 = arith.constant dense<0.000000e+00> : vector<8x16x4xf32>
    %44 = tpu.matmul %41, %43, %cst_56 {dimension_numbers = #tpu.dot_dimension_numbers<[2], [0], [0, 1], [1], [0, 0, 0, 1, 1, 1], [], []>} : vector<8x16x4xf32>, vector<4x4xf32>, vector<8x16x4xf32> -> vector<8x16x4xf32>
    "tpu.trace_stop"() : () -> ()
    %45 = arith.addf %39, %44 : vector<8x16x4xf32>
    %c0_57 = arith.constant 0 : index
    %c0_58 = arith.constant 0 : index
    %c1_59 = arith.constant 1 : index
    %c1_60 = arith.constant 1 : index
    %c0_61 = arith.constant 0 : index
    %46 = vector.load %arg2[%c0_57, %c0_58, %c1_59, %c1_60, %c0_61] : memref<1x1x10x18x4xf32, #tpu.memory_space<vmem>>, vector<1x1x8x16x4xf32>
    %47 = vector.shape_cast %46 : vector<1x1x8x16x4xf32> to vector<8x16x4xf32>
    %c6 = arith.constant 6 : index
    %c0_62 = arith.constant 0 : index
    %c0_63 = arith.constant 0 : index
    %48 = vector.load %arg3[%c6, %c0_62, %c0_63] : memref<16x4x4xf32, #tpu.memory_space<vmem>>, vector<1x4x4xf32>
    %49 = vector.shape_cast %48 : vector<1x4x4xf32> to vector<4x4xf32>
    "tpu.trace_start"() <{level = 10 : i32, message = "hwc,cd->hwd"}> : () -> ()
    %cst_64 = arith.constant dense<0.000000e+00> : vector<8x16x4xf32>
    %50 = tpu.matmul %47, %49, %cst_64 {dimension_numbers = #tpu.dot_dimension_numbers<[2], [0], [0, 1], [1], [0, 0, 0, 1, 1, 1], [], []>} : vector<8x16x4xf32>, vector<4x4xf32>, vector<8x16x4xf32> -> vector<8x16x4xf32>
    "tpu.trace_stop"() : () -> ()
    %51 = arith.addf %45, %50 : vector<8x16x4xf32>
    %c0_65 = arith.constant 0 : index
    %c0_66 = arith.constant 0 : index
    %c1_67 = arith.constant 1 : index
    %c2_68 = arith.constant 2 : index
    %c0_69 = arith.constant 0 : index
    %52 = vector.load %arg2[%c0_65, %c0_66, %c1_67, %c2_68, %c0_69] : memref<1x1x10x18x4xf32, #tpu.memory_space<vmem>>, vector<1x1x8x16x4xf32>
    %53 = vector.shape_cast %52 : vector<1x1x8x16x4xf32> to vector<8x16x4xf32>
    %c7 = arith.constant 7 : index
    %c0_70 = arith.constant 0 : index
    %c0_71 = arith.constant 0 : index
    %54 = vector.load %arg3[%c7, %c0_70, %c0_71] : memref<16x4x4xf32, #tpu.memory_space<vmem>>, vector<1x4x4xf32>
    %55 = vector.shape_cast %54 : vector<1x4x4xf32> to vector<4x4xf32>
    "tpu.trace_start"() <{level = 10 : i32, message = "hwc,cd->hwd"}> : () -> ()
    %cst_72 = arith.constant dense<0.000000e+00> : vector<8x16x4xf32>
    %56 = tpu.matmul %53, %55, %cst_72 {dimension_numbers = #tpu.dot_dimension_numbers<[2], [0], [0, 1], [1], [0, 0, 0, 1, 1, 1], [], []>} : vector<8x16x4xf32>, vector<4x4xf32>, vector<8x16x4xf32> -> vector<8x16x4xf32>
    "tpu.trace_stop"() : () -> ()
    %57 = arith.addf %51, %56 : vector<8x16x4xf32>
    %58 = vector.shape_cast %1 : vector<4xf32> to vector<1x1x4xf32>
    %59 = vector.broadcast %58 : vector<1x1x4xf32> to vector<8x16x4xf32>
    %60 = arith.addf %57, %59 : vector<8x16x4xf32>
    %c0_73 = arith.constant 0 : index
    %c0_74 = arith.constant 0 : index
    %c1_75 = arith.constant 1 : index
    %c0_76 = arith.constant 0 : index
    %c0_77 = arith.constant 0 : index
    %c0_78 = arith.constant 0 : index
    %61 = vector.load %arg5[%c0_73, %c0_74, %c1_75, %c0_76, %c0_77, %c0_78] : memref<1x1x4x8x16x4xf32, #tpu.memory_space<vmem>>, vector<1x1x1x8x16x4xf32>
    %62 = vector.shape_cast %61 : vector<1x1x1x8x16x4xf32> to vector<8x16x4xf32>
    %63 = vector.shape_cast %60 : vector<8x16x4xf32> to vector<1x1x1x8x16x4xf32>
    tpu.vector_store %arg5[%c0_73, %c0_74, %c1_75, %c0_76, %c0_77, %c0_78], %63 {strides = array<i32>} : memref<1x1x4x8x16x4xf32, #tpu.memory_space<vmem>>, vector<1x1x1x8x16x4xf32>,
    %cst_79 = arith.constant 0.000000e+00 : f32
    %64 = vector.broadcast %cst_79 : f32 to vector<8x16x4xf32>
    %c0_80 = arith.constant 0 : index
    %c0_81 = arith.constant 0 : index
    %c1_82 = arith.constant 1 : index
    %c0_83 = arith.constant 0 : index
    %c0_84 = arith.constant 0 : index
    %65 = vector.load %arg2[%c0_80, %c0_81, %c1_82, %c0_83, %c0_84] : memref<1x1x10x18x4xf32, #tpu.memory_space<vmem>>, vector<1x1x8x16x4xf32>
    %66 = vector.shape_cast %65 : vector<1x1x8x16x4xf32> to vector<8x16x4xf32>
    %c8 = arith.constant 8 : index
    %c0_85 = arith.constant 0 : index
    %c0_86 = arith.constant 0 : index
    %67 = vector.load %arg3[%c8, %c0_85, %c0_86] : memref<16x4x4xf32, #tpu.memory_space<vmem>>, vector<1x4x4xf32>
    %68 = vector.shape_cast %67 : vector<1x4x4xf32> to vector<4x4xf32>
    "tpu.trace_start"() <{level = 10 : i32, message = "hwc,cd->hwd"}> : () -> ()
    %cst_87 = arith.constant dense<0.000000e+00> : vector<8x16x4xf32>
    %69 = tpu.matmul %66, %68, %cst_87 {dimension_numbers = #tpu.dot_dimension_numbers<[2], [0], [0, 1], [1], [0, 0, 0, 1, 1, 1], [], []>} : vector<8x16x4xf32>, vector<4x4xf32>, vector<8x16x4xf32> -> vector<8x16x4xf32>
    "tpu.trace_stop"() : () -> ()
    %70 = arith.addf %64, %69 : vector<8x16x4xf32>
    %c0_88 = arith.constant 0 : index
    %c0_89 = arith.constant 0 : index
    %c1_90 = arith.constant 1 : index
    %c1_91 = arith.constant 1 : index
    %c0_92 = arith.constant 0 : index
    %71 = vector.load %arg2[%c0_88, %c0_89, %c1_90, %c1_91, %c0_92] : memref<1x1x10x18x4xf32, #tpu.memory_space<vmem>>, vector<1x1x8x16x4xf32>
    %72 = vector.shape_cast %71 : vector<1x1x8x16x4xf32> to vector<8x16x4xf32>
    %c9 = arith.constant 9 : index
    %c0_93 = arith.constant 0 : index
    %c0_94 = arith.constant 0 : index
    %73 = vector.load %arg3[%c9, %c0_93, %c0_94] : memref<16x4x4xf32, #tpu.memory_space<vmem>>, vector<1x4x4xf32>
    %74 = vector.shape_cast %73 : vector<1x4x4xf32> to vector<4x4xf32>
    "tpu.trace_start"() <{level = 10 : i32, message = "hwc,cd->hwd"}> : () -> ()
    %cst_95 = arith.constant dense<0.000000e+00> : vector<8x16x4xf32>
    %75 = tpu.matmul %72, %74, %cst_95 {dimension_numbers = #tpu.dot_dimension_numbers<[2], [0], [0, 1], [1], [0, 0, 0, 1, 1, 1], [], []>} : vector<8x16x4xf32>, vector<4x4xf32>, vector<8x16x4xf32> -> vector<8x16x4xf32>
    "tpu.trace_stop"() : () -> ()
    %76 = arith.addf %70, %75 : vector<8x16x4xf32>
    %c0_96 = arith.constant 0 : index
    %c0_97 = arith.constant 0 : index
    %c2_98 = arith.constant 2 : index
    %c0_99 = arith.constant 0 : index
    %c0_100 = arith.constant 0 : index
    %77 = vector.load %arg2[%c0_96, %c0_97, %c2_98, %c0_99, %c0_100] : memref<1x1x10x18x4xf32, #tpu.memory_space<vmem>>, vector<1x1x8x16x4xf32>
    %78 = vector.shape_cast %77 : vector<1x1x8x16x4xf32> to vector<8x16x4xf32>
    %c10 = arith.constant 10 : index
    %c0_101 = arith.constant 0 : index
    %c0_102 = arith.constant 0 : index
    %79 = vector.load %arg3[%c10, %c0_101, %c0_102] : memref<16x4x4xf32, #tpu.memory_space<vmem>>, vector<1x4x4xf32>
    %80 = vector.shape_cast %79 : vector<1x4x4xf32> to vector<4x4xf32>
    "tpu.trace_start"() <{level = 10 : i32, message = "hwc,cd->hwd"}> : () -> ()
    %cst_103 = arith.constant dense<0.000000e+00> : vector<8x16x4xf32>
    %81 = tpu.matmul %78, %80, %cst_103 {dimension_numbers = #tpu.dot_dimension_numbers<[2], [0], [0, 1], [1], [0, 0, 0, 1, 1, 1], [], []>} : vector<8x16x4xf32>, vector<4x4xf32>, vector<8x16x4xf32> -> vector<8x16x4xf32>
    "tpu.trace_stop"() : () -> ()
    %82 = arith.addf %76, %81 : vector<8x16x4xf32>
    %c0_104 = arith.constant 0 : index
    %c0_105 = arith.constant 0 : index
    %c2_106 = arith.constant 2 : index
    %c1_107 = arith.constant 1 : index
    %c0_108 = arith.constant 0 : index
    %83 = vector.load %arg2[%c0_104, %c0_105, %c2_106, %c1_107, %c0_108] : memref<1x1x10x18x4xf32, #tpu.memory_space<vmem>>, vector<1x1x8x16x4xf32>
    %84 = vector.shape_cast %83 : vector<1x1x8x16x4xf32> to vector<8x16x4xf32>
    %c11 = arith.constant 11 : index
    %c0_109 = arith.constant 0 : index
    %c0_110 = arith.constant 0 : index
    %85 = vector.load %arg3[%c11, %c0_109, %c0_110] : memref<16x4x4xf32, #tpu.memory_space<vmem>>, vector<1x4x4xf32>
    %86 = vector.shape_cast %85 : vector<1x4x4xf32> to vector<4x4xf32>
    "tpu.trace_start"() <{level = 10 : i32, message = "hwc,cd->hwd"}> : () -> ()
    %cst_111 = arith.constant dense<0.000000e+00> : vector<8x16x4xf32>
    %87 = tpu.matmul %84, %86, %cst_111 {dimension_numbers = #tpu.dot_dimension_numbers<[2], [0], [0, 1], [1], [0, 0, 0, 1, 1, 1], [], []>} : vector<8x16x4xf32>, vector<4x4xf32>, vector<8x16x4xf32> -> vector<8x16x4xf32>
    "tpu.trace_stop"() : () -> ()
    %88 = arith.addf %82, %87 : vector<8x16x4xf32>
    %89 = vector.shape_cast %1 : vector<4xf32> to vector<1x1x4xf32>
    %90 = vector.broadcast %89 : vector<1x1x4xf32> to vector<8x16x4xf32>
    %91 = arith.addf %88, %90 : vector<8x16x4xf32>
    %c0_112 = arith.constant 0 : index
    %c0_113 = arith.constant 0 : index
    %c2_114 = arith.constant 2 : index
    %c0_115 = arith.constant 0 : index
    %c0_116 = arith.constant 0 : index
    %c0_117 = arith.constant 0 : index
    %92 = vector.load %arg5[%c0_112, %c0_113, %c2_114, %c0_115, %c0_116, %c0_117] : memref<1x1x4x8x16x4xf32, #tpu.memory_space<vmem>>, vector<1x1x1x8x16x4xf32>
    %93 = vector.shape_cast %92 : vector<1x1x1x8x16x4xf32> to vector<8x16x4xf32>
    %94 = vector.shape_cast %91 : vector<8x16x4xf32> to vector<1x1x1x8x16x4xf32>
    tpu.vector_store %arg5[%c0_112, %c0_113, %c2_114, %c0_115, %c0_116, %c0_117], %94 {strides = array<i32>} : memref<1x1x4x8x16x4xf32, #tpu.memory_space<vmem>>, vector<1x1x1x8x16x4xf32>,
    %cst_118 = arith.constant 0.000000e+00 : f32
    %95 = vector.broadcast %cst_118 : f32 to vector<8x16x4xf32>
    %c0_119 = arith.constant 0 : index
    %c0_120 = arith.constant 0 : index
    %c1_121 = arith.constant 1 : index
    %c1_122 = arith.constant 1 : index
    %c0_123 = arith.constant 0 : index
    %96 = vector.load %arg2[%c0_119, %c0_120, %c1_121, %c1_122, %c0_123] : memref<1x1x10x18x4xf32, #tpu.memory_space<vmem>>, vector<1x1x8x16x4xf32>
    %97 = vector.shape_cast %96 : vector<1x1x8x16x4xf32> to vector<8x16x4xf32>
    %c12 = arith.constant 12 : index
    %c0_124 = arith.constant 0 : index
    %c0_125 = arith.constant 0 : index
    %98 = vector.load %arg3[%c12, %c0_124, %c0_125] : memref<16x4x4xf32, #tpu.memory_space<vmem>>, vector<1x4x4xf32>
    %99 = vector.shape_cast %98 : vector<1x4x4xf32> to vector<4x4xf32>
    "tpu.trace_start"() <{level = 10 : i32, message = "hwc,cd->hwd"}> : () -> ()
    %cst_126 = arith.constant dense<0.000000e+00> : vector<8x16x4xf32>
    %100 = tpu.matmul %97, %99, %cst_126 {dimension_numbers = #tpu.dot_dimension_numbers<[2], [0], [0, 1], [1], [0, 0, 0, 1, 1, 1], [], []>} : vector<8x16x4xf32>, vector<4x4xf32>, vector<8x16x4xf32> -> vector<8x16x4xf32>
    "tpu.trace_stop"() : () -> ()
    %101 = arith.addf %95, %100 : vector<8x16x4xf32>
    %c0_127 = arith.constant 0 : index
    %c0_128 = arith.constant 0 : index
    %c1_129 = arith.constant 1 : index
    %c2_130 = arith.constant 2 : index
    %c0_131 = arith.constant 0 : index
    %102 = vector.load %arg2[%c0_127, %c0_128, %c1_129, %c2_130, %c0_131] : memref<1x1x10x18x4xf32, #tpu.memory_space<vmem>>, vector<1x1x8x16x4xf32>
    %103 = vector.shape_cast %102 : vector<1x1x8x16x4xf32> to vector<8x16x4xf32>
    %c13 = arith.constant 13 : index
    %c0_132 = arith.constant 0 : index
    %c0_133 = arith.constant 0 : index
    %104 = vector.load %arg3[%c13, %c0_132, %c0_133] : memref<16x4x4xf32, #tpu.memory_space<vmem>>, vector<1x4x4xf32>
    %105 = vector.shape_cast %104 : vector<1x4x4xf32> to vector<4x4xf32>
    "tpu.trace_start"() <{level = 10 : i32, message = "hwc,cd->hwd"}> : () -> ()
    %cst_134 = arith.constant dense<0.000000e+00> : vector<8x16x4xf32>
    %106 = tpu.matmul %103, %105, %cst_134 {dimension_numbers = #tpu.dot_dimension_numbers<[2], [0], [0, 1], [1], [0, 0, 0, 1, 1, 1], [], []>} : vector<8x16x4xf32>, vector<4x4xf32>, vector<8x16x4xf32> -> vector<8x16x4xf32>
    "tpu.trace_stop"() : () -> ()
    %107 = arith.addf %101, %106 : vector<8x16x4xf32>
    %c0_135 = arith.constant 0 : index
    %c0_136 = arith.constant 0 : index
    %c2_137 = arith.constant 2 : index
    %c1_138 = arith.constant 1 : index
    %c0_139 = arith.constant 0 : index
    %108 = vector.load %arg2[%c0_135, %c0_136, %c2_137, %c1_138, %c0_139] : memref<1x1x10x18x4xf32, #tpu.memory_space<vmem>>, vector<1x1x8x16x4xf32>
    %109 = vector.shape_cast %108 : vector<1x1x8x16x4xf32> to vector<8x16x4xf32>
    %c14 = arith.constant 14 : index
    %c0_140 = arith.constant 0 : index
    %c0_141 = arith.constant 0 : index
    %110 = vector.load %arg3[%c14, %c0_140, %c0_141] : memref<16x4x4xf32, #tpu.memory_space<vmem>>, vector<1x4x4xf32>
    %111 = vector.shape_cast %110 : vector<1x4x4xf32> to vector<4x4xf32>
    "tpu.trace_start"() <{level = 10 : i32, message = "hwc,cd->hwd"}> : () -> ()
    %cst_142 = arith.constant dense<0.000000e+00> : vector<8x16x4xf32>
    %112 = tpu.matmul %109, %111, %cst_142 {dimension_numbers = #tpu.dot_dimension_numbers<[2], [0], [0, 1], [1], [0, 0, 0, 1, 1, 1], [], []>} : vector<8x16x4xf32>, vector<4x4xf32>, vector<8x16x4xf32> -> vector<8x16x4xf32>
    "tpu.trace_stop"() : () -> ()
    %113 = arith.addf %107, %112 : vector<8x16x4xf32>
    %c0_143 = arith.constant 0 : index
    %c0_144 = arith.constant 0 : index
    %c2_145 = arith.constant 2 : index
    %c2_146 = arith.constant 2 : index
    %c0_147 = arith.constant 0 : index
    %114 = vector.load %arg2[%c0_143, %c0_144, %c2_145, %c2_146, %c0_147] : memref<1x1x10x18x4xf32, #tpu.memory_space<vmem>>, vector<1x1x8x16x4xf32>
    %115 = vector.shape_cast %114 : vector<1x1x8x16x4xf32> to vector<8x16x4xf32>
    %c15 = arith.constant 15 : index
    %c0_148 = arith.constant 0 : index
    %c0_149 = arith.constant 0 : index
    %116 = vector.load %arg3[%c15, %c0_148, %c0_149] : memref<16x4x4xf32, #tpu.memory_space<vmem>>, vector<1x4x4xf32>
    %117 = vector.shape_cast %116 : vector<1x4x4xf32> to vector<4x4xf32>
    "tpu.trace_start"() <{level = 10 : i32, message = "hwc,cd->hwd"}> : () -> ()
    %cst_150 = arith.constant dense<0.000000e+00> : vector<8x16x4xf32>
    %118 = tpu.matmul %115, %117, %cst_150 {dimension_numbers = #tpu.dot_dimension_numbers<[2], [0], [0, 1], [1], [0, 0, 0, 1, 1, 1], [], []>} : vector<8x16x4xf32>, vector<4x4xf32>, vector<8x16x4xf32> -> vector<8x16x4xf32>
    "tpu.trace_stop"() : () -> ()
    %119 = arith.addf %113, %118 : vector<8x16x4xf32>
    %120 = vector.shape_cast %1 : vector<4xf32> to vector<1x1x4xf32>
    %121 = vector.broadcast %120 : vector<1x1x4xf32> to vector<8x16x4xf32>
    %122 = arith.addf %119, %121 : vector<8x16x4xf32>
    %c0_151 = arith.constant 0 : index
    %c0_152 = arith.constant 0 : index
    %c3_153 = arith.constant 3 : index
    %c0_154 = arith.constant 0 : index
    %c0_155 = arith.constant 0 : index
    %c0_156 = arith.constant 0 : index
    %123 = vector.load %arg5[%c0_151, %c0_152, %c3_153, %c0_154, %c0_155, %c0_156] : memref<1x1x4x8x16x4xf32, #tpu.memory_space<vmem>>, vector<1x1x1x8x16x4xf32>
    %124 = vector.shape_cast %123 : vector<1x1x1x8x16x4xf32> to vector<8x16x4xf32>
    %125 = vector.shape_cast %122 : vector<8x16x4xf32> to vector<1x1x1x8x16x4xf32>
    tpu.vector_store %arg5[%c0_151, %c0_152, %c3_153, %c0_154, %c0_155, %c0_156], %125 {strides = array<i32>} : memref<1x1x4x8x16x4xf32, #tpu.memory_space<vmem>>, vector<1x1x1x8x16x4xf32>,
    return
  }
  func.func @transform_0(%arg0: i32, %arg1: i32) -> (i32, i32, i32, i32, i32) {
    %c0_i32 = arith.constant 0 : i32
    %c0_i32_0 = arith.constant 0 : i32
    %c0_i32_1 = arith.constant 0 : i32
    %c0_i32_2 = arith.constant 0 : i32
    return %arg0, %arg1, %c0_i32, %c0_i32_0, %c0_i32_1 : i32, i32, i32, i32, i32
  }
  func.func @transform_1(%arg0: i32, %arg1: i32) -> (i32, i32, i32) {
    %c0_i32 = arith.constant 0 : i32
    %c0_i32_0 = arith.constant 0 : i32
    %c0_i32_1 = arith.constant 0 : i32
    %c0_i32_2 = arith.constant 0 : i32
    return %c0_i32, %c0_i32_0, %c0_i32_1 : i32, i32, i32
  }
  func.func @transform_2(%arg0: i32, %arg1: i32) -> (i32, i32) {
    %c0_i32 = arith.constant 0 : i32
    %c0_i32_0 = arith.constant 0 : i32
    %c0_i32_1 = arith.constant 0 : i32
    return %c0_i32, %c0_i32_0 : i32, i32
  }
  func.func @transform_3(%arg0: i32, %arg1: i32) -> (i32, i32, i32, i32, i32, i32) {
    %c0_i32 = arith.constant 0 : i32
    %c0_i32_0 = arith.constant 0 : i32
    %c0_i32_1 = arith.constant 0 : i32
    %c0_i32_2 = arith.constant 0 : i32
    %c0_i32_3 = arith.constant 0 : i32
    return %arg0, %arg1, %c0_i32, %c0_i32_0, %c0_i32_1, %c0_i32_2 : i32, i32, i32, i32, i32, i32
  }
}

</mosaic_0001>

<bundles_post_ra>
// kernel: tpu_custom_call.1
= control target key start
LH: loop header
LB: loop body
LE: loop exit
PB: predicated region body
PF: predicated region fallthrough
CT: control target
= control target key end

     0   :  { %s5516_s12 = smov 0   ;;  %s5518_s13 = smov 0   ;;  %s6524_s0 = inlined_call_operand.vmem [shape: f32[2,2,10,18,4], index: 0, kind: input, shape index: {}]   ;;  %s6525_s1 = inlined_call_operand.vmem [shape: f32[16,4,4], index: 1, kind: input, shape index: {}]   ;;  %s6526_s2 = inlined_call_operand.vmem [shape: f32[1,4], index: 2, kind: input, shape index: {}]   ;;  %s6527_s3 = inlined_call_operand.vmem [shape: f32[2,2,4,8,16,4], index: 3, kind: output, shape index: {}]  }
   0x1   :  { %s5520_s14 = smov 0   ;;  %s5522_s15 = smov 0  }
   0x2   :  { %s5524_s16 = smov 0  }
   0x3 LB: > { %s22_s17 = sadd.s32 1, %s5486_s14  ;;  %s25_s18 = sadd.s32 1, %s5490_s15  ;;  %s5494_s16 = sphi %s5524_s16, %s13_s16   ;;  %s5490_s15 = sphi %s5522_s15, %s6531_s15   ;;  %s5486_s14 = sphi %s5520_s14, %s6530_s14   ;;  %s5482_s13 = sphi %s5518_s13, %s6529_s13   ;;  %s5478_s12 = sphi %s5516_s12, %s6528_s12  }
   0x4   : > { %p23_p0 = scmp.ge.s32.totalorder %s22_s17, 2  ;;  %p3999_p1 = scmp.ge.s32.totalorder %s5494_s16, 1 }
   0x5   : > { %p157_p2 = scmp.lt.s32.totalorder %s5494_s16, 5 }
   0x6   : > { %s6533_s17 = smov (%p23_p0, %s22_s17), 0  ;;  %s6535_s18 = smov (!%p23_p0, %s25_s18), %s5490_s15 }
   0x7   : > { %p158_p3 = pnand %p3999_p1, %p157_p2  ;;  %p27_p4 = scmp.ge.s32.totalorder %s6535_s18, 2 }
   0x8   : > { %v4004_v0 = vld [vmem:[%s6525_s1 + $0x4] sm:$0xf] (!%p158_p3)  ;;  %vm292_vm0 = vcmask (!%p158_p3), 1043456   ;;  %v4109_v1 = vld [vmem:[%s6525_s1 + $0x14] sm:$0xf] (!%p158_p3)  ;;  %p189_p5 = scmp.lt.s32.totalorder (!%p158_p3), %s5482_s13, 1 }
   0x9   : > { %s6537_s18 = smov (%p27_p4, %s6535_s18), 0  ;;  %161 = sbr.rel (%p158_p3) target bundleno = 494 (0x1ee), region = 32 }
   0xa   : > { %4806 = vmatprep.subr.msk.mxu0 (!%p158_p3), %vm292_vm0, %v4004_v0  ;;  %4910 = vmatprep.subr.msk.mxu1 (!%p158_p3), %vm292_vm0, %v4109_v1  ;;  %p191_p6 = scmp.lt.s32.totalorder (!%p158_p3), %s5478_s12, 1  ;;  %v224_v2 = vld [vmem:[%s6525_s1] sm:$0xf] (!%p158_p3)  ;;  %v4108_v3 = vld [vmem:[%s6525_s1 + $0x10] sm:$0xf] (!%p158_p3)  ;;  %vm243_vm1 = vcmask (!%p158_p3), 31744  }
   0xb   : > { %4807 = vmatpush3.msk.msra.mxu0 (!%p158_p3), %vm292_vm0, %v4004_v0  ;;  %4911 = vmatpush3.msk.msra.mxu1 (!%p158_p3), %vm292_vm0, %v4109_v1  ;;  %v5598_v10 = vld [vmem:[%s6525_s1 + $0x8] sm:$0xf] (!%p158_p3)  ;;  %v5603_v11 = vld [vmem:[%s6525_s1 + $0x18] sm:$0xf] (!%p158_p3)  ;;  %v4089_v41 = vld [vmem:[%s6525_s1 + $0xc] sm:$0xf] (!%p158_p3) }
   0xc   : > { %4832 = vmatprep.subr.msk.mxu0 (!%p158_p3), %vm292_vm0, %v224_v2  ;;  %4936 = vmatprep.subr.msk.mxu1 (!%p158_p3), %vm292_vm0, %v4108_v3  ;;  %v4194_v42 = vld [vmem:[%s6525_s1 + $0x1c] sm:$0xf] (!%p158_p3)  ;;  %v4261_v56 = vld [vmem:[%s6525_s1 + $0x24] sm:$0xf] (!%p158_p3)  ;;  %v4413_v57 = vld [vmem:[%s6525_s1 + $0x34] sm:$0xf] (!%p158_p3) }
   0xd   : > { %v4244_v62 = vld [vmem:[%s6525_s1 + $0x20] sm:$0xf] (!%p158_p3)  ;;  %v4396_v63 = vld [vmem:[%s6525_s1 + $0x30] sm:$0xf] (!%p158_p3) }
  0x10   : > { %s6539_s13 = smov (!%p189_p5, %s5482_s13), 1  ;;  %s6541_s12 = smov (!%p191_p6, %s5478_s12), 1 }
  0x11   : > { %s5415_s27 = smul.u32 60, %s6539_s13  ;;  %s4001_s19 = sshll.u32 %s6541_s12, 6 }
  0x12   : > { %s5414_s28 = smul.u32 30, %s6541_s12  ;;  %s4002_s20 = sshll.u32 %s6539_s13, 7 }
  0x13   : > { %s204_s21 = sadd.s32 %s4002_s20, %s4001_s19 }
  0x14   : > { %s195_s29 = sadd.s32 %s5415_s27, %s5414_s28  ;;  %s4003_s22 = sshll.u32 %s204_s21, 3 }
  0x15   : > { %s4000_s30 = sshll.u32 %s195_s29, 3  ;;  %s6315_s27 = scalar_lea.vmem %s6527_s3, %s4003_s22 }
  0x16   : > { %s5573_s6 = scalar_lea.vmem %s6524_s0, %s4000_s30 }
  0x17   : > { %v5576_v4 = vld [vmem:[%s5573_s6 + $0x1] sm:$0xff]  ;;  %v5580_v6 = vld [vmem:[%s5573_s6 + $0x9] sm:$0xff]  ;;  %v5587_v8 = vld [vmem:[%s5573_s6 + $0x19] sm:$0xff] }
  0x18   : > { %v1154_v5 = vld [vmem:[%s5573_s6 + $0x2] sm:$0xff]  ;;  %4808 = vmatprep.mubr.msk.f32.mxu0 %vm243_vm1, %v5576_v4  ;;  %v1155_v7 = vld [vmem:[%s5573_s6 + $0xa] sm:$0xff]  ;;  %v5590_v9 = vld [vmem:[%s5573_s6 + $0x1a] sm:$0xff] }
  0x19   : > { %4912 = vmatprep.mubr.msk.f32.mxu1 %vm243_vm1, %v1154_v5  ;;  %4809 = vmatmul.mubr.msk.f32.vlgmr.msra.gmra.mrb[0].mxu0 %vm243_vm1, %v5580_v6  ;;  %v5608_v12 = vld [vmem:[%s5573_s6 + $0x21] sm:$0xff]  ;;  %v5618_v14 = vld [vmem:[%s5573_s6 + $0x31] sm:$0xff]  ;;  %v5636_v16 = vld [vmem:[%s5573_s6 + $0x39] sm:$0xff] }
  0x1a   : > { %4913 = vmatmul.mubr.msk.f32.vlgmr.msra.gmra.mrb[0].mxu1 %vm243_vm1, %v1155_v7  ;;  %4833 = vmatpush3.msk.msra.mxu0 %vm292_vm0, %v224_v2  ;;  %v5611_v13 = vld [vmem:[%s5573_s6 + $0x22] sm:$0xff]  ;;  %v5621_v15 = vld [vmem:[%s5573_s6 + $0x32] sm:$0xff]  ;;  %v5639_v17 = vld [vmem:[%s5573_s6 + $0x3a] sm:$0xff] }
  0x1b   : > { %4937 = vmatpush3.msk.msra.mxu1 %vm292_vm0, %v4108_v3  ;;  %4811 = vmatprep.mubr.msk.f32.mxu0 %vm243_vm1, %v5587_v8  ;;  %v5642_v18 = vld [vmem:[%s5573_s6 + $0x49] sm:$0xff]  ;;  %v5656_v20 = vld [vmem:[%s5573_s6 + $0x51] sm:$0xff]  ;;  %v5662_v22 = vld [vmem:[%s5573_s6 + $0x61] sm:$0xff] }
  0x1c   : > { %4915 = vmatprep.mubr.msk.f32.mxu1 %vm243_vm1, %v5590_v9  ;;  %4858 = vmatprep.subr.msk.mxu0 %vm292_vm0, %v5598_v10  ;;  %v5645_v19 = vld [vmem:[%s5573_s6 + $0x4a] sm:$0xff]  ;;  %v5659_v21 = vld [vmem:[%s5573_s6 + $0x52] sm:$0xff]  ;;  %v5665_v23 = vld [vmem:[%s5573_s6 + $0x62] sm:$0xff] }
  0x1d   : > { %4962 = vmatprep.subr.msk.mxu1 %vm292_vm0, %v5603_v11  ;;  %4812 = vmatmul.mubr.msk.f32.gmra.mrb[2].mxu0 %vm243_vm1, %v5608_v12  ;;  %v5676_v24 = vld [vmem:[%s5573_s6 + $0x69] sm:$0xff]  ;;  %v5682_v26 = vld [vmem:[%s5573_s6 + $0x79] sm:$0xff]  ;;  %v5696_v28 = vld [vmem:[%s5573_s6 + $0x81] sm:$0xff] }
  0x1e   : > { %4916 = vmatmul.mubr.msk.f32.gmra.mrb[2].mxu1 %vm243_vm1, %v5611_v13  ;;  %4814 = vmatprep.mubr.msk.f32.mxu0 %vm243_vm1, %v5618_v14  ;;  %v5679_v25 = vld [vmem:[%s5573_s6 + $0x6a] sm:$0xff]  ;;  %v5685_v27 = vld [vmem:[%s5573_s6 + $0x7a] sm:$0xff]  ;;  %v5699_v29 = vld [vmem:[%s5573_s6 + $0x82] sm:$0xff] }
  0x1f   : > { %4918 = vmatprep.mubr.msk.f32.mxu1 %vm243_vm1, %v5621_v15  ;;  %v5702_v30 = vld [vmem:[%s5573_s6 + $0x91] sm:$0xff]  ;;  %v5716_v32 = vld [vmem:[%s5573_s6 + $0x99] sm:$0xff]  ;;  %v5722_v34 = vld [vmem:[%s5573_s6 + $0xa9] sm:$0xff] }
  0x20   : > { %v5705_v31 = vld [vmem:[%s5573_s6 + $0x92] sm:$0xff]  ;;  %v5719_v33 = vld [vmem:[%s5573_s6 + $0x9a] sm:$0xff]  ;;  %v5725_v35 = vld [vmem:[%s5573_s6 + $0xaa] sm:$0xff] }
  0x21   : > { %4815 = vmatmul.mubr.msk.f32.gmra.mrb[4].mxu0 %vm243_vm1, %v5636_v16  ;;  %v5736_v36 = vld [vmem:[%s5573_s6 + $0xb1] sm:$0xff]  ;;  %v208_v38 = vld [vmem:[%s5573_s6] sm:$0xff]  ;;  %v209_v39 = vld [vmem:[%s5573_s6 + $0x8] sm:$0xff] }
  0x22   : > { %4919 = vmatmul.mubr.msk.f32.gmra.mrb[4].mxu1 %vm243_vm1, %v5639_v17  ;;  %4817 = vmatprep.mubr.msk.f32.mxu0 %vm243_vm1, %v5642_v18  ;;  %v5739_v37 = vld [vmem:[%s5573_s6 + $0xb2] sm:$0xff]  ;;  %v5767_v43 = vld [vmem:[%s5573_s6 + $0x20] sm:$0xff]  ;;  %v5790_v46 = vld [vmem:[%s5573_s6 + $0x48] sm:$0xff] }
  0x23   : > { %4921 = vmatprep.mubr.msk.f32.mxu1 %vm243_vm1, %v5645_v19  ;;  %v5751_v40 = vld [vmem:[%s5573_s6 + $0x18] sm:$0xff]  ;;  %v5774_v44 = vld [vmem:[%s5573_s6 + $0x30] sm:$0xff]  ;;  %v5804_v48 = vld [vmem:[%s5573_s6 + $0x60] sm:$0xff] }
  0x24   : > { %v5787_v45 = vld [vmem:[%s5573_s6 + $0x38] sm:$0xff]  ;;  %v5801_v47 = vld [vmem:[%s5573_s6 + $0x50] sm:$0xff]  ;;  %v5815_v49 = vld [vmem:[%s5573_s6 + $0x68] sm:$0xff] }
  0x25   : > { %4818 = vmatmul.mubr.msk.f32.gmra.mrb[6].mxu0 %vm243_vm1, %v5656_v20  ;;  %v5818_v50 = vld [vmem:[%s5573_s6 + $0x78] sm:$0xff]  ;;  %v5829_v51 = vld [vmem:[%s5573_s6 + $0x80] sm:$0xff]  ;;  %v5832_v52 = vld [vmem:[%s5573_s6 + $0x90] sm:$0xff] }
  0x26   : > { %4922 = vmatmul.mubr.msk.f32.gmra.mrb[6].mxu1 %vm243_vm1, %v5659_v21  ;;  %4820 = vmatprep.mubr.msk.f32.mxu0 %vm243_vm1, %v5662_v22  ;;  %v5843_v53 = vld [vmem:[%s5573_s6 + $0x98] sm:$0xff]  ;;  %v5846_v54 = vld [vmem:[%s5573_s6 + $0xa8] sm:$0xff]  ;;  %v5857_v55 = vld [vmem:[%s5573_s6 + $0xb0] sm:$0xff] }
  0x27   : > { %4924 = vmatprep.mubr.msk.f32.mxu1 %vm243_vm1, %v5665_v23  ;;  %v5926_v58 = vld [vmem:[%s5573_s6 + $0xc0] sm:$0xff]  ;;  %v5940_v60 = vld [vmem:[%s5573_s6 + $0xc8] sm:$0xff]  ;;  %v4464_v3 = vld [vmem:[%s6525_s1 + $0x38] sm:$0xf] }
  0x28   : > { %v5929_v59 = vld [vmem:[%s5573_s6 + $0xc1] sm:$0xff]  ;;  %v5943_v61 = vld [vmem:[%s5573_s6 + $0xc9] sm:$0xff]  ;;  %v4498_v5 = vld [vmem:[%s6525_s1 + $0x3c] sm:$0xf] }
  0x29   : > { %4821 = vmatmul.mubr.msk.f32.gmra.mrb[8].mxu0 %vm243_vm1, %v5676_v24  ;;  %v6012_v0 = vld [vmem:[%s5573_s6 + $0xc2] sm:$0xff]  ;;  %v6023_v1 = vld [vmem:[%s5573_s6 + $0xca] sm:$0xff]  ;;  %v4462_v7 = vld [vmem:[%s5573_s6 + $0xd9] sm:$0xff] }
  0x2a   : > { %4925 = vmatmul.mubr.msk.f32.gmra.mrb[8].mxu1 %vm243_vm1, %v5679_v25  ;;  %4823 = vmatprep.mubr.msk.f32.mxu0 %vm243_vm1, %v5682_v26  ;;  %v4312_v2 = vld [vmem:[%s6525_s1 + $0x28] sm:$0xf] }
  0x2b   : > { %4927 = vmatprep.mubr.msk.f32.mxu1 %vm243_vm1, %v5685_v27 }
  0x2d   : > { %4824 = vmatmul.mubr.msk.f32.gmra.mrb[10].mxu0 %vm243_vm1, %v5696_v28 }
  0x2e   : > { %4928 = vmatmul.mubr.msk.f32.gmra.mrb[10].mxu1 %vm243_vm1, %v5699_v29  ;;  %4826 = vmatprep.mubr.msk.f32.mxu0 %vm243_vm1, %v5702_v30 }
  0x2f   : > { %4930 = vmatprep.mubr.msk.f32.mxu1 %vm243_vm1, %v5705_v31 }
  0x31   : > { %4827 = vmatmul.mubr.msk.f32.gmra.mrb[12].mxu0 %vm243_vm1, %v5716_v32 }
  0x32   : > { %4931 = vmatmul.mubr.msk.f32.gmra.mrb[12].mxu1 %vm243_vm1, %v5719_v33  ;;  %4829 = vmatprep.mubr.msk.f32.mxu0 %vm243_vm1, %v5722_v34 }
  0x33   : > { %4933 = vmatprep.mubr.msk.f32.mxu1 %vm243_vm1, %v5725_v35 }
  0x35   : > { %4830 = vmatmul.mubr.msk.f32.gmra.mrb[14].mxu0 %vm243_vm1, %v5736_v36 }
  0x36   : > { %4934 = vmatmul.mubr.msk.f32.gmra.mrb[14].mxu1 %vm243_vm1, %v5739_v37  ;;  %4834 = vmatprep.mubr.msk.f32.mxu0 %vm243_vm1, %v208_v38 }
  0x37   : > { %4938 = vmatprep.mubr.msk.f32.mxu1 %vm243_vm1, %v5576_v4  ;;  %v4346_v4 = vld [vmem:[%s6525_s1 + $0x2c] sm:$0xf] }
  0x39   : > { %4835 = vmatmul.mubr.msk.f32.vlgmr.msra.gmra.mrb[0].mxu0 %vm243_vm1, %v209_v39 }
  0x3a   : > { %4939 = vmatmul.mubr.msk.f32.vlgmr.msra.gmra.mrb[0].mxu1 %vm243_vm1, %v5580_v6  ;;  %4859 = vmatpush3.msk.msra.mxu0 %vm292_vm0, %v5598_v10  ;;  %v4310_v6 = vld [vmem:[%s5573_s6 + $0xd8] sm:$0xff] }
  0x3b   : > { %4963 = vmatpush3.msk.msra.mxu1 %vm292_vm0, %v5603_v11  ;;  %4837 = vmatprep.mubr.msk.f32.mxu0 %vm243_vm1, %v5751_v40  ;;  %v4496_v10 = vld [vmem:[%s5573_s6 + $0xda] sm:$0xff]  ;;  %v4497_v11 = vld [vmem:[%s5573_s6 + $0xe2] sm:$0xff] }
  0x3c   : > { %4941 = vmatprep.mubr.msk.f32.mxu1 %vm243_vm1, %v5587_v8  ;;  %4884 = vmatprep.subr.msk.mxu0 %vm292_vm0, %v4089_v41 }
  0x3d   : > { %4988 = vmatprep.subr.msk.mxu1 %vm292_vm0, %v4194_v42  ;;  %4838 = vmatmul.mubr.msk.f32.gmra.mrb[2].mxu0 %vm243_vm1, %v5767_v43 }
  0x3e   : > { %4942 = vmatmul.mubr.msk.f32.gmra.mrb[2].mxu1 %vm243_vm1, %v5608_v12  ;;  %4840 = vmatprep.mubr.msk.f32.mxu0 %vm243_vm1, %v5774_v44 }
  0x3f   : > { %4944 = vmatprep.mubr.msk.f32.mxu1 %vm243_vm1, %v5618_v14 }
  0x41   : > { %4841 = vmatmul.mubr.msk.f32.gmra.mrb[4].mxu0 %vm243_vm1, %v5787_v45 }
  0x42   : > { %4945 = vmatmul.mubr.msk.f32.gmra.mrb[4].mxu1 %vm243_vm1, %v5636_v16  ;;  %4843 = vmatprep.mubr.msk.f32.mxu0 %vm243_vm1, %v5790_v46 }
  0x43   : > { %4947 = vmatprep.mubr.msk.f32.mxu1 %vm243_vm1, %v5642_v18 }
  0x45   : > { %4844 = vmatmul.mubr.msk.f32.gmra.mrb[6].mxu0 %vm243_vm1, %v5801_v47 }
  0x46   : > { %4948 = vmatmul.mubr.msk.f32.gmra.mrb[6].mxu1 %vm243_vm1, %v5656_v20  ;;  %4846 = vmatprep.mubr.msk.f32.mxu0 %vm243_vm1, %v5804_v48 }
  0x47   : > { %4950 = vmatprep.mubr.msk.f32.mxu1 %vm243_vm1, %v5662_v22 }
  0x49   : > { %4847 = vmatmul.mubr.msk.f32.gmra.mrb[8].mxu0 %vm243_vm1, %v5815_v49 }
  0x4a   : > { %4951 = vmatmul.mubr.msk.f32.gmra.mrb[8].mxu1 %vm243_vm1, %v5676_v24  ;;  %4849 = vmatprep.mubr.msk.f32.mxu0 %vm243_vm1, %v5818_v50 }
  0x4b   : > { %4953 = vmatprep.mubr.msk.f32.mxu1 %vm243_vm1, %v5682_v26 }
  0x4d   : > { %4850 = vmatmul.mubr.msk.f32.gmra.mrb[10].mxu0 %vm243_vm1, %v5829_v51 }
  0x4e   : > { %4954 = vmatmul.mubr.msk.f32.gmra.mrb[10].mxu1 %vm243_vm1, %v5696_v28  ;;  %4852 = vmatprep.mubr.msk.f32.mxu0 %vm243_vm1, %v5832_v52 }
  0x4f   : > { %4956 = vmatprep.mubr.msk.f32.mxu1 %vm243_vm1, %v5702_v30 }
  0x51   : > { %4853 = vmatmul.mubr.msk.f32.gmra.mrb[12].mxu0 %vm243_vm1, %v5843_v53 }
  0x52   : > { %4957 = vmatmul.mubr.msk.f32.gmra.mrb[12].mxu1 %vm243_vm1, %v5716_v32  ;;  %4855 = vmatprep.mubr.msk.f32.mxu0 %vm243_vm1, %v5846_v54 }
  0x53   : > { %4959 = vmatprep.mubr.msk.f32.mxu1 %vm243_vm1, %v5722_v34 }
  0x55   : > { %4856 = vmatmul.mubr.msk.f32.gmra.mrb[14].mxu0 %vm243_vm1, %v5857_v55 }
  0x56   : > { %4960 = vmatmul.mubr.msk.f32.gmra.mrb[14].mxu1 %vm243_vm1, %v5736_v36  ;;  %4860 = vmatprep.mubr.msk.f32.mxu0 %vm243_vm1, %v5751_v40 }
  0x57   : > { %4964 = vmatprep.mubr.msk.f32.mxu1 %vm243_vm1, %v5587_v8 }
  0x59   : > { %4861 = vmatmul.mubr.msk.f32.vlgmr.msra.gmra.mrb[0].mxu0 %vm243_vm1, %v5767_v43 }
  0x5a   : > { %4965 = vmatmul.mubr.msk.f32.vlgmr.msra.gmra.mrb[0].mxu1 %vm243_vm1, %v5608_v12  ;;  %4885 = vmatpush3.msk.msra.mxu0 %vm292_vm0, %v4089_v41 }
  0x5b   : > { %4989 = vmatpush3.msk.msra.mxu1 %vm292_vm0, %v4194_v42  ;;  %4863 = vmatprep.mubr.msk.f32.mxu0 %vm243_vm1, %v5774_v44 }
  0x5c   : > { %4967 = vmatprep.mubr.msk.f32.mxu1 %vm243_vm1, %v5618_v14  ;;  %5014 = vmatprep.subr.msk.mxu0 %vm292_vm0, %v4261_v56 }
  0x5d   : > { %5118 = vmatprep.subr.msk.mxu1 %vm292_vm0, %v4413_v57  ;;  %4864 = vmatmul.mubr.msk.f32.gmra.mrb[2].mxu0 %vm243_vm1, %v5787_v45 }
  0x5e   : > { %4968 = vmatmul.mubr.msk.f32.gmra.mrb[2].mxu1 %vm243_vm1, %v5636_v16  ;;  %4866 = vmatprep.mubr.msk.f32.mxu0 %vm243_vm1, %v5790_v46 }
  0x5f   : > { %4970 = vmatprep.mubr.msk.f32.mxu1 %vm243_vm1, %v5642_v18 }
  0x61   : > { %4867 = vmatmul.mubr.msk.f32.gmra.mrb[4].mxu0 %vm243_vm1, %v5801_v47 }
  0x62   : > { %4971 = vmatmul.mubr.msk.f32.gmra.mrb[4].mxu1 %vm243_vm1, %v5656_v20  ;;  %4869 = vmatprep.mubr.msk.f32.mxu0 %vm243_vm1, %v5804_v48 }
  0x63   : > { %4973 = vmatprep.mubr.msk.f32.mxu1 %vm243_vm1, %v5662_v22 }
  0x65   : > { %4870 = vmatmul.mubr.msk.f32.gmra.mrb[6].mxu0 %vm243_vm1, %v5815_v49 }
  0x66   : > { %4974 = vmatmul.mubr.msk.f32.gmra.mrb[6].mxu1 %vm243_vm1, %v5676_v24  ;;  %4872 = vmatprep.mubr.msk.f32.mxu0 %vm243_vm1, %v5818_v50 }
  0x67   : > { %4976 = vmatprep.mubr.msk.f32.mxu1 %vm243_vm1, %v5682_v26 }
  0x69   : > { %4873 = vmatmul.mubr.msk.f32.gmra.mrb[8].mxu0 %vm243_vm1, %v5829_v51 }
  0x6a   : > { %4977 = vmatmul.mubr.msk.f32.gmra.mrb[8].mxu1 %vm243_vm1, %v5696_v28  ;;  %4875 = vmatprep.mubr.msk.f32.mxu0 %vm243_vm1, %v5832_v52 }
  0x6b   : > { %4979 = vmatprep.mubr.msk.f32.mxu1 %vm243_vm1, %v5702_v30 }
  0x6d   : > { %4876 = vmatmul.mubr.msk.f32.gmra.mrb[10].mxu0 %vm243_vm1, %v5843_v53 }
  0x6e   : > { %4980 = vmatmul.mubr.msk.f32.gmra.mrb[10].mxu1 %vm243_vm1, %v5716_v32  ;;  %4878 = vmatprep.mubr.msk.f32.mxu0 %vm243_vm1, %v5846_v54 }
  0x6f   : > { %4982 = vmatprep.mubr.msk.f32.mxu1 %vm243_vm1, %v5722_v34 }
  0x71   : > { %4879 = vmatmul.mubr.msk.f32.gmra.mrb[12].mxu0 %vm243_vm1, %v5857_v55 }
  0x72   : > { %4983 = vmatmul.mubr.msk.f32.gmra.mrb[12].mxu1 %vm243_vm1, %v5736_v36  ;;  %4881 = vmatprep.mubr.msk.f32.mxu0 %vm243_vm1, %v5926_v58 }
  0x73   : > { %4985 = vmatprep.mubr.msk.f32.mxu1 %vm243_vm1, %v5929_v59 }
  0x75   : > { %4882 = vmatmul.mubr.msk.f32.gmra.mrb[14].mxu0 %vm243_vm1, %v5940_v60 }
  0x76   : > { %4986 = vmatmul.mubr.msk.f32.gmra.mrb[14].mxu1 %vm243_vm1, %v5943_v61  ;;  %4886 = vmatprep.mubr.msk.f32.mxu0 %vm243_vm1, %v5587_v8 }
  0x77   : > { %4990 = vmatprep.mubr.msk.f32.mxu1 %vm243_vm1, %v5590_v9 }
  0x79   : > { %4887 = vmatmul.mubr.msk.f32.vlgmr.msra.gmra.mrb[0].mxu0 %vm243_vm1, %v5608_v12 }
  0x7a   : > { %4991 = vmatmul.mubr.msk.f32.vlgmr.msra.gmra.mrb[0].mxu1 %vm243_vm1, %v5611_v13  ;;  %5015 = vmatpush3.msk.msra.mxu0 %vm292_vm0, %v4261_v56 }
  0x7b   : > { %5119 = vmatpush3.msk.msra.mxu1 %vm292_vm0, %v4413_v57  ;;  %4889 = vmatprep.mubr.msk.f32.mxu0 %vm243_vm1, %v5618_v14 }
  0x7c   : > { %4993 = vmatprep.mubr.msk.f32.mxu1 %vm243_vm1, %v5621_v15  ;;  %5040 = vmatprep.subr.msk.mxu0 %vm292_vm0, %v4244_v62 }
  0x7d   : > { %5144 = vmatprep.subr.msk.mxu1 %vm292_vm0, %v4396_v63  ;;  %4890 = vmatmul.mubr.msk.f32.gmra.mrb[2].mxu0 %vm243_vm1, %v5636_v16 }
  0x7e   : > { %4994 = vmatmul.mubr.msk.f32.gmra.mrb[2].mxu1 %vm243_vm1, %v5639_v17  ;;  %4892 = vmatprep.mubr.msk.f32.mxu0 %vm243_vm1, %v5642_v18 }
  0x7f   : > { %4996 = vmatprep.mubr.msk.f32.mxu1 %vm243_vm1, %v5645_v19 }
  0x81   : > { %4893 = vmatmul.mubr.msk.f32.gmra.mrb[4].mxu0 %vm243_vm1, %v5656_v20 }
  0x82   : > { %4997 = vmatmul.mubr.msk.f32.gmra.mrb[4].mxu1 %vm243_vm1, %v5659_v21  ;;  %4895 = vmatprep.mubr.msk.f32.mxu0 %vm243_vm1, %v5662_v22 }
  0x83   : > { %4999 = vmatprep.mubr.msk.f32.mxu1 %vm243_vm1, %v5665_v23 }
  0x85   : > { %4896 = vmatmul.mubr.msk.f32.gmra.mrb[6].mxu0 %vm243_vm1, %v5676_v24 }
  0x86   : > { %5000 = vmatmul.mubr.msk.f32.gmra.mrb[6].mxu1 %vm243_vm1, %v5679_v25  ;;  %4898 = vmatprep.mubr.msk.f32.mxu0 %vm243_vm1, %v5682_v26 }
  0x87   : > { %5002 = vmatprep.mubr.msk.f32.mxu1 %vm243_vm1, %v5685_v27 }
  0x89   : > { %4899 = vmatmul.mubr.msk.f32.gmra.mrb[8].mxu0 %vm243_vm1, %v5696_v28 }
  0x8a   : > { %5003 = vmatmul.mubr.msk.f32.gmra.mrb[8].mxu1 %vm243_vm1, %v5699_v29  ;;  %4901 = vmatprep.mubr.msk.f32.mxu0 %vm243_vm1, %v5702_v30 }
  0x8b   : > { %5005 = vmatprep.mubr.msk.f32.mxu1 %vm243_vm1, %v5705_v31 }
  0x8d   : > { %4902 = vmatmul.mubr.msk.f32.gmra.mrb[10].mxu0 %vm243_vm1, %v5716_v32 }
  0x8e   : > { %5006 = vmatmul.mubr.msk.f32.gmra.mrb[10].mxu1 %vm243_vm1, %v5719_v33  ;;  %4904 = vmatprep.mubr.msk.f32.mxu0 %vm243_vm1, %v5722_v34 }
  0x8f   : > { %5008 = vmatprep.mubr.msk.f32.mxu1 %vm243_vm1, %v5725_v35 }
  0x91   : > { %4905 = vmatmul.mubr.msk.f32.gmra.mrb[12].mxu0 %vm243_vm1, %v5736_v36 }
  0x92   : > { %5009 = vmatmul.mubr.msk.f32.gmra.mrb[12].mxu1 %vm243_vm1, %v5739_v37  ;;  %4907 = vmatprep.mubr.msk.f32.mxu0 %vm243_vm1, %v5929_v59 }
  0x93   : > { %5011 = vmatprep.mubr.msk.f32.mxu1 %vm243_vm1, %v6012_v0 }
  0x95   : > { %4908 = vmatmul.mubr.msk.f32.gmra.mrb[14].mxu0 %vm243_vm1, %v5943_v61 }
  0x96   : > { %5012 = vmatmul.mubr.msk.f32.gmra.mrb[14].mxu1 %vm243_vm1, %v6023_v1  ;;  %5016 = vmatprep.mubr.msk.f32.mxu0 %vm243_vm1, %v5587_v8 }
  0x97   : > { %5120 = vmatprep.mubr.msk.f32.mxu1 %vm243_vm1, %v5590_v9  ;;  %v4463_v9 = vld [vmem:[%s5573_s6 + $0xe1] sm:$0xff] }
  0x99   : > { %5017 = vmatmul.mubr.msk.f32.vlgmr.msra.gmra.mrb[16].mxu0 %vm243_vm1, %v5608_v12 }
  0x9a   : > { %5121 = vmatmul.mubr.msk.f32.vlgmr.msra.gmra.mrb[16].mxu1 %vm243_vm1, %v5611_v13  ;;  %5041 = vmatpush3.msk.msra.mxu0 %vm292_vm0, %v4244_v62 }
  0x9b   : > { %5145 = vmatpush3.msk.msra.mxu1 %vm292_vm0, %v4396_v63  ;;  %5019 = vmatprep.mubr.msk.f32.mxu0 %vm243_vm1, %v5618_v14 }
  0x9c   : > { %5123 = vmatprep.mubr.msk.f32.mxu1 %vm243_vm1, %v5621_v15  ;;  %5066 = vmatprep.subr.msk.mxu0 %vm292_vm0, %v4312_v2 }
  0x9d   : > { %5170 = vmatprep.subr.msk.mxu1 %vm292_vm0, %v4464_v3  ;;  %5020 = vmatmul.mubr.msk.f32.gmra.mrb[18].mxu0 %vm243_vm1, %v5636_v16 }
  0x9e   : > { %5124 = vmatmul.mubr.msk.f32.gmra.mrb[18].mxu1 %vm243_vm1, %v5639_v17  ;;  %5022 = vmatprep.mubr.msk.f32.mxu0 %vm243_vm1, %v5642_v18 }
  0x9f   : > { %5126 = vmatprep.mubr.msk.f32.mxu1 %vm243_vm1, %v5645_v19 }
  0xa1   : > { %5023 = vmatmul.mubr.msk.f32.gmra.mrb[20].mxu0 %vm243_vm1, %v5656_v20 }
  0xa2   : > { %5127 = vmatmul.mubr.msk.f32.gmra.mrb[20].mxu1 %vm243_vm1, %v5659_v21  ;;  %5025 = vmatprep.mubr.msk.f32.mxu0 %vm243_vm1, %v5662_v22 }
  0xa3   : > { %5129 = vmatprep.mubr.msk.f32.mxu1 %vm243_vm1, %v5665_v23 }
  0xa5   : > { %5026 = vmatmul.mubr.msk.f32.gmra.mrb[22].mxu0 %vm243_vm1, %v5676_v24 }
  0xa6   : > { %5130 = vmatmul.mubr.msk.f32.gmra.mrb[22].mxu1 %vm243_vm1, %v5679_v25  ;;  %5028 = vmatprep.mubr.msk.f32.mxu0 %vm243_vm1, %v5682_v26 }
  0xa7   : > { %5132 = vmatprep.mubr.msk.f32.mxu1 %vm243_vm1, %v5685_v27 }
  0xa9   : > { %5029 = vmatmul.mubr.msk.f32.gmra.mrb[24].mxu0 %vm243_vm1, %v5696_v28 }
  0xaa   : > { %5133 = vmatmul.mubr.msk.f32.gmra.mrb[24].mxu1 %vm243_vm1, %v5699_v29  ;;  %5031 = vmatprep.mubr.msk.f32.mxu0 %vm243_vm1, %v5702_v30 }
  0xab   : > { %5135 = vmatprep.mubr.msk.f32.mxu1 %vm243_vm1, %v5705_v31 }
  0xad   : > { %5032 = vmatmul.mubr.msk.f32.gmra.mrb[26].mxu0 %vm243_vm1, %v5716_v32 }
  0xae   : > { %5136 = vmatmul.mubr.msk.f32.gmra.mrb[26].mxu1 %vm243_vm1, %v5719_v33  ;;  %5034 = vmatprep.mubr.msk.f32.mxu0 %vm243_vm1, %v5722_v34 }
  0xaf   : > { %5138 = vmatprep.mubr.msk.f32.mxu1 %vm243_vm1, %v5725_v35 }
  0xb1   : > { %5035 = vmatmul.mubr.msk.f32.gmra.mrb[28].mxu0 %vm243_vm1, %v5736_v36 }
  0xb2   : > { %5139 = vmatmul.mubr.msk.f32.gmra.mrb[28].mxu1 %vm243_vm1, %v5739_v37  ;;  %5037 = vmatprep.mubr.msk.f32.mxu0 %vm243_vm1, %v5929_v59 }
  0xb3   : > { %5141 = vmatprep.mubr.msk.f32.mxu1 %vm243_vm1, %v6012_v0 }
  0xb5   : > { %5038 = vmatmul.mubr.msk.f32.gmra.mrb[30].mxu0 %vm243_vm1, %v5943_v61 }
  0xb6   : > { %5142 = vmatmul.mubr.msk.f32.gmra.mrb[30].mxu1 %vm243_vm1, %v6023_v1  ;;  %5042 = vmatprep.mubr.msk.f32.mxu0 %vm243_vm1, %v5751_v40 }
  0xb7   : > { %5146 = vmatprep.mubr.msk.f32.mxu1 %vm243_vm1, %v5587_v8  ;;  %v4311_v8 = vld [vmem:[%s5573_s6 + $0xe0] sm:$0xff] }
  0xb9   : > { %5043 = vmatmul.mubr.msk.f32.vlgmr.msra.gmra.mrb[16].mxu0 %vm243_vm1, %v5767_v43 }
  0xba   : > { %5147 = vmatmul.mubr.msk.f32.vlgmr.msra.gmra.mrb[16].mxu1 %vm243_vm1, %v5608_v12  ;;  %5067 = vmatpush3.msk.msra.mxu0 %vm292_vm0, %v4312_v2  ;;  %v6310_v12 = vld [vmem:[%s6526_s2] ss:$0 sm:$0xff] }
  0xbb   : > { %5171 = vmatpush3.msk.msra.mxu1 %vm292_vm0, %v4464_v3  ;;  %5045 = vmatprep.mubr.msk.f32.mxu0 %vm243_vm1, %v5774_v44 }
  0xbc   : > { %5149 = vmatprep.mubr.msk.f32.mxu1 %vm243_vm1, %v5618_v14  ;;  %5092 = vmatprep.subr.msk.mxu0 %vm292_vm0, %v4346_v4 }
  0xbd   : > { %5196 = vmatprep.subr.msk.mxu1 %vm292_vm0, %v4498_v5  ;;  %5046 = vmatmul.mubr.msk.f32.gmra.mrb[18].mxu0 %vm243_vm1, %v5787_v45 }
  0xbe   : > { %5150 = vmatmul.mubr.msk.f32.gmra.mrb[18].mxu1 %vm243_vm1, %v5636_v16  ;;  %5048 = vmatprep.mubr.msk.f32.mxu0 %vm243_vm1, %v5790_v46 }
  0xbf   : > { %5152 = vmatprep.mubr.msk.f32.mxu1 %vm243_vm1, %v5642_v18 }
  0xc1   : > { %5049 = vmatmul.mubr.msk.f32.gmra.mrb[20].mxu0 %vm243_vm1, %v5801_v47 }
  0xc2   : > { %5153 = vmatmul.mubr.msk.f32.gmra.mrb[20].mxu1 %vm243_vm1, %v5656_v20  ;;  %5051 = vmatprep.mubr.msk.f32.mxu0 %vm243_vm1, %v5804_v48 }
  0xc3   : > { %5155 = vmatprep.mubr.msk.f32.mxu1 %vm243_vm1, %v5662_v22 }
  0xc5   : > { %5052 = vmatmul.mubr.msk.f32.gmra.mrb[22].mxu0 %vm243_vm1, %v5815_v49 }
  0xc6   : > { %5156 = vmatmul.mubr.msk.f32.gmra.mrb[22].mxu1 %vm243_vm1, %v5676_v24  ;;  %5054 = vmatprep.mubr.msk.f32.mxu0 %vm243_vm1, %v5818_v50 }
  0xc7   : > { %5158 = vmatprep.mubr.msk.f32.mxu1 %vm243_vm1, %v5682_v26 }
  0xc9   : > { %5055 = vmatmul.mubr.msk.f32.gmra.mrb[24].mxu0 %vm243_vm1, %v5829_v51 }
  0xca   : > { %5159 = vmatmul.mubr.msk.f32.gmra.mrb[24].mxu1 %vm243_vm1, %v5696_v28  ;;  %5057 = vmatprep.mubr.msk.f32.mxu0 %vm243_vm1, %v5832_v52 }
  0xcb   : > { %5161 = vmatprep.mubr.msk.f32.mxu1 %vm243_vm1, %v5702_v30 }
  0xcd   : > { %5058 = vmatmul.mubr.msk.f32.gmra.mrb[26].mxu0 %vm243_vm1, %v5843_v53 }
  0xce   : > { %5162 = vmatmul.mubr.msk.f32.gmra.mrb[26].mxu1 %vm243_vm1, %v5716_v32  ;;  %5060 = vmatprep.mubr.msk.f32.mxu0 %vm243_vm1, %v5846_v54 }
  0xcf   : > { %5164 = vmatprep.mubr.msk.f32.mxu1 %vm243_vm1, %v5722_v34 }
  0xd1   : > { %5061 = vmatmul.mubr.msk.f32.gmra.mrb[28].mxu0 %vm243_vm1, %v5857_v55 }
  0xd2   : > { %5165 = vmatmul.mubr.msk.f32.gmra.mrb[28].mxu1 %vm243_vm1, %v5736_v36  ;;  %5063 = vmatprep.mubr.msk.f32.mxu0 %vm243_vm1, %v5926_v58 }
  0xd3   : > { %5167 = vmatprep.mubr.msk.f32.mxu1 %vm243_vm1, %v5929_v59 }
  0xd5   : > { %5064 = vmatmul.mubr.msk.f32.gmra.mrb[30].mxu0 %vm243_vm1, %v5940_v60 }
  0xd6   : > { %5168 = vmatmul.mubr.msk.f32.gmra.mrb[30].mxu1 %vm243_vm1, %v5943_v61  ;;  %5068 = vmatprep.mubr.msk.f32.mxu0 %vm243_vm1, %v5774_v44 }
  0xd7   : > { %5172 = vmatprep.mubr.msk.f32.mxu1 %vm243_vm1, %v5618_v14 }
  0xd9   : > { %5069 = vmatmul.mubr.msk.f32.vlgmr.msra.gmra.mrb[16].mxu0 %vm243_vm1, %v5787_v45 }
  0xda   : > { %5173 = vmatmul.mubr.msk.f32.vlgmr.msra.gmra.mrb[16].mxu1 %vm243_vm1, %v5636_v16  ;;  %5093 = vmatpush3.msk.msra.mxu0 %vm292_vm0, %v4346_v4 }
  0xdb   : > { %5197 = vmatpush3.msk.msra.mxu1 %vm292_vm0, %v4498_v5  ;;  %5071 = vmatprep.mubr.msk.f32.mxu0 %vm243_vm1, %v5790_v46 }
  0xdc   : > { %5175 = vmatprep.mubr.msk.f32.mxu1 %vm243_vm1, %v5642_v18 }
  0xdd   : > { %5072 = vmatmul.mubr.msk.f32.gmra.mrb[18].mxu0 %vm243_vm1, %v5801_v47 }
  0xde   : > { %5176 = vmatmul.mubr.msk.f32.gmra.mrb[18].mxu1 %vm243_vm1, %v5656_v20  ;;  %5074 = vmatprep.mubr.msk.f32.mxu0 %vm243_vm1, %v5804_v48 }
  0xdf   : > { %5178 = vmatprep.mubr.msk.f32.mxu1 %vm243_vm1, %v5662_v22 }
  0xe1   : > { %5075 = vmatmul.mubr.msk.f32.gmra.mrb[20].mxu0 %vm243_vm1, %v5815_v49 }
  0xe2   : > { %5179 = vmatmul.mubr.msk.f32.gmra.mrb[20].mxu1 %vm243_vm1, %v5676_v24  ;;  %5077 = vmatprep.mubr.msk.f32.mxu0 %vm243_vm1, %v5818_v50 }
  0xe3   : > { %5181 = vmatprep.mubr.msk.f32.mxu1 %vm243_vm1, %v5682_v26 }
  0xe5   : > { %5078 = vmatmul.mubr.msk.f32.gmra.mrb[22].mxu0 %vm243_vm1, %v5829_v51 }
  0xe6   : > { %5182 = vmatmul.mubr.msk.f32.gmra.mrb[22].mxu1 %vm243_vm1, %v5696_v28  ;;  %5080 = vmatprep.mubr.msk.f32.mxu0 %vm243_vm1, %v5832_v52 }
  0xe7   : > { %5184 = vmatprep.mubr.msk.f32.mxu1 %vm243_vm1, %v5702_v30 }
  0xe9   : > { %5081 = vmatmul.mubr.msk.f32.gmra.mrb[24].mxu0 %vm243_vm1, %v5843_v53 }
  0xea   : > { %5185 = vmatmul.mubr.msk.f32.gmra.mrb[24].mxu1 %vm243_vm1, %v5716_v32  ;;  %5083 = vmatprep.mubr.msk.f32.mxu0 %vm243_vm1, %v5846_v54 }
  0xeb   : > { %5187 = vmatprep.mubr.msk.f32.mxu1 %vm243_vm1, %v5722_v34 }
  0xed   : > { %5084 = vmatmul.mubr.msk.f32.gmra.mrb[26].mxu0 %vm243_vm1, %v5857_v55 }
  0xee   : > { %5188 = vmatmul.mubr.msk.f32.gmra.mrb[26].mxu1 %vm243_vm1, %v5736_v36  ;;  %5086 = vmatprep.mubr.msk.f32.mxu0 %vm243_vm1, %v5926_v58 }
  0xef   : > { %5190 = vmatprep.mubr.msk.f32.mxu1 %vm243_vm1, %v5929_v59 }
  0xf1   : > { %5087 = vmatmul.mubr.msk.f32.gmra.mrb[28].mxu0 %vm243_vm1, %v5940_v60 }
  0xf2   : > { %5191 = vmatmul.mubr.msk.f32.gmra.mrb[28].mxu1 %vm243_vm1, %v5943_v61  ;;  %5089 = vmatprep.mubr.msk.f32.mxu0 %vm243_vm1, %v4310_v6 }
  0xf3   : > { %5193 = vmatprep.mubr.msk.f32.mxu1 %vm243_vm1, %v4462_v7 }
  0xf5   : > { %5090 = vmatmul.mubr.msk.f32.gmra.mrb[30].mxu0 %vm243_vm1, %v4311_v8 }
  0xf6   : > { %5194 = vmatmul.mubr.msk.f32.gmra.mrb[30].mxu1 %vm243_vm1, %v4463_v9  ;;  %5094 = vmatprep.mubr.msk.f32.mxu0 %vm243_vm1, %v5618_v14 }
  0xf7   : > { %5198 = vmatprep.mubr.msk.f32.mxu1 %vm243_vm1, %v5621_v15 }
  0xf9   : > { %5095 = vmatmul.mubr.msk.f32.vlgmr.msra.gmra.mrb[16].mxu0 %vm243_vm1, %v5636_v16 }
  0xfa   : > { %5199 = vmatmul.mubr.msk.f32.vlgmr.msra.gmra.mrb[16].mxu1 %vm243_vm1, %v5639_v17  ;;  %5097 = vmatprep.mubr.msk.f32.mxu0 %vm243_vm1, %v5642_v18 }
  0xfb   : > { %5201 = vmatprep.mubr.msk.f32.mxu1 %vm243_vm1, %v5645_v19 }
  0xfd   : > { %5098 = vmatmul.mubr.msk.f32.gmra.mrb[18].mxu0 %vm243_vm1, %v5656_v20 }
  0xfe   : > { %5202 = vmatmul.mubr.msk.f32.gmra.mrb[18].mxu1 %vm243_vm1, %v5659_v21  ;;  %5100 = vmatprep.mubr.msk.f32.mxu0 %vm243_vm1, %v5662_v22 }
  0xff   : > { %5204 = vmatprep.mubr.msk.f32.mxu1 %vm243_vm1, %v5665_v23 }
 0x101   : > { %5101 = vmatmul.mubr.msk.f32.gmra.mrb[20].mxu0 %vm243_vm1, %v5676_v24 }
 0x102   : > { %5205 = vmatmul.mubr.msk.f32.gmra.mrb[20].mxu1 %vm243_vm1, %v5679_v25  ;;  %5103 = vmatprep.mubr.msk.f32.mxu0 %vm243_vm1, %v5682_v26 }
 0x103   : > { %5207 = vmatprep.mubr.msk.f32.mxu1 %vm243_vm1, %v5685_v27 }
 0x105   : > { %5104 = vmatmul.mubr.msk.f32.gmra.mrb[22].mxu0 %vm243_vm1, %v5696_v28 }
 0x106   : > { %5208 = vmatmul.mubr.msk.f32.gmra.mrb[22].mxu1 %vm243_vm1, %v5699_v29  ;;  %5106 = vmatprep.mubr.msk.f32.mxu0 %vm243_vm1, %v5702_v30 }
 0x107   : > { %5210 = vmatprep.mubr.msk.f32.mxu1 %vm243_vm1, %v5705_v31 }
 0x109   : > { %5107 = vmatmul.mubr.msk.f32.gmra.mrb[24].mxu0 %vm243_vm1, %v5716_v32 }
 0x10a   : > { %5211 = vmatmul.mubr.msk.f32.gmra.mrb[24].mxu1 %vm243_vm1, %v5719_v33  ;;  %5109 = vmatprep.mubr.msk.f32.mxu0 %vm243_vm1, %v5722_v34 }
 0x10b   : > { %5213 = vmatprep.mubr.msk.f32.mxu1 %vm243_vm1, %v5725_v35 }
 0x10d   : > { %5110 = vmatmul.mubr.msk.f32.gmra.mrb[26].mxu0 %vm243_vm1, %v5736_v36 }
 0x10e   : > { %5214 = vmatmul.mubr.msk.f32.gmra.mrb[26].mxu1 %vm243_vm1, %v5739_v37  ;;  %5112 = vmatprep.mubr.msk.f32.mxu0 %vm243_vm1, %v5929_v59 }
 0x10f   : > { %5216 = vmatprep.mubr.msk.f32.mxu1 %vm243_vm1, %v6012_v0 }
 0x111   : > { %5113 = vmatmul.mubr.msk.f32.gmra.mrb[28].mxu0 %vm243_vm1, %v5943_v61 }
 0x112   : > { %5217 = vmatmul.mubr.msk.f32.gmra.mrb[28].mxu1 %vm243_vm1, %v6023_v1  ;;  %5115 = vmatprep.mubr.msk.f32.mxu0 %vm243_vm1, %v4462_v7 }
 0x113   : > { %5219 = vmatprep.mubr.msk.f32.mxu1 %vm243_vm1, %v4496_v10 }
 0x115   : > { %5116 = vmatmul.mubr.msk.f32.gmra.mrb[30].mxu0 %vm243_vm1, %v4463_v9 }
 0x116   : > { %5220 = vmatmul.mubr.msk.f32.gmra.mrb[30].mxu1 %vm243_vm1, %v4497_v11 }
 0x14c   : > { %v4888_v13 = vpop.f32.mrb[0].mxu0 }
 0x14d   : > { %v4992_v14 = vpop.f32.mrb[0].mxu1  ;;  %v1105_v15 = vadd.f32 %v4888_v13, %v6310_v12  ;;  %v1003_v17 = vpop.f32.mrb[1].mxu0 }
 0x14e   : > { %v2025_v16 = vadd.f32 %v4992_v14, %v6310_v12  ;;  %v1929_v18 = vpop.f32.mrb[1].mxu1  ;;  %v1104_v19 = vadd.f32 %v6310_v12, %v1003_v17 }
 0x14f   : > { %v2024_v20 = vadd.f32 %v6310_v12, %v1929_v18  ;;  %1121 = vst.msk [vmem:[%s6315_s27 + $0x8] sm:$0xff] %vm243_vm1, %v1105_v15 }
 0x150   : > { %4213 = vst.msk [vmem:[%s6315_s27 + $0x88] sm:$0xff] %vm243_vm1, %v2025_v16  ;;  %1120 = vst.msk [vmem:[%s6315_s27] sm:$0xff] %vm243_vm1, %v1104_v19  ;;  %v4891_v21 = vpop.f32.mrb[2].mxu0 }
 0x151   : > { %4212 = vst.msk [vmem:[%s6315_s27 + $0x80] sm:$0xff] %vm243_vm1, %v2024_v20  ;;  %v4995_v22 = vpop.f32.mrb[2].mxu1  ;;  %v1107_v23 = vadd.f32 %v4891_v21, %v6310_v12  ;;  %v1013_v25 = vpop.f32.mrb[3].mxu0 }
 0x152   : > { %v2027_v24 = vadd.f32 %v4995_v22, %v6310_v12  ;;  %v1939_v26 = vpop.f32.mrb[3].mxu1  ;;  %v1106_v27 = vadd.f32 %v6310_v12, %v1013_v25 }
 0x153   : > { %v2026_v28 = vadd.f32 %v6310_v12, %v1939_v26  ;;  %1123 = vst.msk [vmem:[%s6315_s27 + $0x18] sm:$0xff] %vm243_vm1, %v1107_v23 }
 0x154   : > { %4215 = vst.msk [vmem:[%s6315_s27 + $0x98] sm:$0xff] %vm243_vm1, %v2027_v24  ;;  %1122 = vst.msk [vmem:[%s6315_s27 + $0x10] sm:$0xff] %vm243_vm1, %v1106_v27  ;;  %v4894_v29 = vpop.f32.mrb[4].mxu0 }
 0x155   : > { %4214 = vst.msk [vmem:[%s6315_s27 + $0x90] sm:$0xff] %vm243_vm1, %v2026_v28  ;;  %v4998_v30 = vpop.f32.mrb[4].mxu1  ;;  %v1109_v31 = vadd.f32 %v4894_v29, %v6310_v12  ;;  %v1023_v33 = vpop.f32.mrb[5].mxu0 }
 0x156   : > { %v2029_v32 = vadd.f32 %v4998_v30, %v6310_v12  ;;  %v1949_v34 = vpop.f32.mrb[5].mxu1  ;;  %v1108_v35 = vadd.f32 %v6310_v12, %v1023_v33 }
 0x157   : > { %v2028_v36 = vadd.f32 %v6310_v12, %v1949_v34  ;;  %1125 = vst.msk [vmem:[%s6315_s27 + $0x28] sm:$0xff] %vm243_vm1, %v1109_v31 }
 0x158   : > { %4217 = vst.msk [vmem:[%s6315_s27 + $0xa8] sm:$0xff] %vm243_vm1, %v2029_v32  ;;  %1124 = vst.msk [vmem:[%s6315_s27 + $0x20] sm:$0xff] %vm243_vm1, %v1108_v35  ;;  %v4897_v37 = vpop.f32.mrb[6].mxu0 }
 0x159   : > { %4216 = vst.msk [vmem:[%s6315_s27 + $0xa0] sm:$0xff] %vm243_vm1, %v2028_v36  ;;  %v5001_v38 = vpop.f32.mrb[6].mxu1  ;;  %v1111_v39 = vadd.f32 %v4897_v37, %v6310_v12  ;;  %v1033_v41 = vpop.f32.mrb[7].mxu0 }
 0x15a   : > { %v2031_v40 = vadd.f32 %v5001_v38, %v6310_v12  ;;  %v1959_v42 = vpop.f32.mrb[7].mxu1  ;;  %v1110_v43 = vadd.f32 %v6310_v12, %v1033_v41 }
 0x15b   : > { %v2030_v44 = vadd.f32 %v6310_v12, %v1959_v42  ;;  %1127 = vst.msk [vmem:[%s6315_s27 + $0x38] sm:$0xff] %vm243_vm1, %v1111_v39 }
 0x15c   : > { %4219 = vst.msk [vmem:[%s6315_s27 + $0xb8] sm:$0xff] %vm243_vm1, %v2031_v40  ;;  %1126 = vst.msk [vmem:[%s6315_s27 + $0x30] sm:$0xff] %vm243_vm1, %v1110_v43  ;;  %v4900_v45 = vpop.f32.mrb[8].mxu0 }
 0x15d   : > { %4218 = vst.msk [vmem:[%s6315_s27 + $0xb0] sm:$0xff] %vm243_vm1, %v2030_v44  ;;  %v5004_v46 = vpop.f32.mrb[8].mxu1  ;;  %v1113_v47 = vadd.f32 %v4900_v45, %v6310_v12  ;;  %v1043_v49 = vpop.f32.mrb[9].mxu0 }
 0x15e   : > { %v2033_v48 = vadd.f32 %v5004_v46, %v6310_v12  ;;  %v1969_v50 = vpop.f32.mrb[9].mxu1  ;;  %v1112_v51 = vadd.f32 %v6310_v12, %v1043_v49 }
 0x15f   : > { %v2032_v52 = vadd.f32 %v6310_v12, %v1969_v50  ;;  %1129 = vst.msk [vmem:[%s6315_s27 + $0x48] sm:$0xff] %vm243_vm1, %v1113_v47 }
 0x160   : > { %4221 = vst.msk [vmem:[%s6315_s27 + $0xc8] sm:$0xff] %vm243_vm1, %v2033_v48  ;;  %1128 = vst.msk [vmem:[%s6315_s27 + $0x40] sm:$0xff] %vm243_vm1, %v1112_v51  ;;  %v4903_v53 = vpop.f32.mrb[10].mxu0 }
 0x161   : > { %4220 = vst.msk [vmem:[%s6315_s27 + $0xc0] sm:$0xff] %vm243_vm1, %v2032_v52  ;;  %v5007_v54 = vpop.f32.mrb[10].mxu1  ;;  %v1115_v55 = vadd.f32 %v4903_v53, %v6310_v12  ;;  %v1053_v57 = vpop.f32.mrb[11].mxu0 }
 0x162   : > { %v2035_v56 = vadd.f32 %v5007_v54, %v6310_v12  ;;  %v1979_v58 = vpop.f32.mrb[11].mxu1  ;;  %v1114_v59 = vadd.f32 %v6310_v12, %v1053_v57 }
 0x163   : > { %v2034_v60 = vadd.f32 %v6310_v12, %v1979_v58  ;;  %1131 = vst.msk [vmem:[%s6315_s27 + $0x58] sm:$0xff] %vm243_vm1, %v1115_v55 }
 0x164   : > { %4223 = vst.msk [vmem:[%s6315_s27 + $0xd8] sm:$0xff] %vm243_vm1, %v2035_v56  ;;  %1130 = vst.msk [vmem:[%s6315_s27 + $0x50] sm:$0xff] %vm243_vm1, %v1114_v59  ;;  %v4906_v61 = vpop.f32.mrb[12].mxu0 }
 0x165   : > { %4222 = vst.msk [vmem:[%s6315_s27 + $0xd0] sm:$0xff] %vm243_vm1, %v2034_v60  ;;  %v5010_v62 = vpop.f32.mrb[12].mxu1  ;;  %v1117_v63 = vadd.f32 %v4906_v61, %v6310_v12  ;;  %v1063_v1 = vpop.f32.mrb[13].mxu0 }
 0x166   : > { %v2037_v0 = vadd.f32 %v5010_v62, %v6310_v12  ;;  %v1989_v2 = vpop.f32.mrb[13].mxu1  ;;  %v1116_v3 = vadd.f32 %v6310_v12, %v1063_v1 }
 0x167   : > { %v2036_v4 = vadd.f32 %v6310_v12, %v1989_v2  ;;  %1133 = vst.msk [vmem:[%s6315_s27 + $0x68] sm:$0xff] %vm243_vm1, %v1117_v63 }
 0x168   : > { %4225 = vst.msk [vmem:[%s6315_s27 + $0xe8] sm:$0xff] %vm243_vm1, %v2037_v0  ;;  %1132 = vst.msk [vmem:[%s6315_s27 + $0x60] sm:$0xff] %vm243_vm1, %v1116_v3  ;;  %v4909_v5 = vpop.f32.mrb[14].mxu0 }
 0x169   : > { %4224 = vst.msk [vmem:[%s6315_s27 + $0xe0] sm:$0xff] %vm243_vm1, %v2036_v4  ;;  %v5013_v6 = vpop.f32.mrb[14].mxu1  ;;  %v1119_v7 = vadd.f32 %v4909_v5, %v6310_v12  ;;  %v1073_v9 = vpop.f32.mrb[15].mxu0 }
 0x16a   : > { %v2039_v8 = vadd.f32 %v5013_v6, %v6310_v12  ;;  %v1999_v10 = vpop.f32.mrb[15].mxu1  ;;  %v1118_v11 = vadd.f32 %v6310_v12, %v1073_v9 }
 0x16b   : > { %v2038_v13 = vadd.f32 %v6310_v12, %v1999_v10  ;;  %1135 = vst.msk [vmem:[%s6315_s27 + $0x78] sm:$0xff] %vm243_vm1, %v1119_v7 }
 0x16c   : > { %4227 = vst.msk [vmem:[%s6315_s27 + $0xf8] sm:$0xff] %vm243_vm1, %v2039_v8  ;;  %1134 = vst.msk [vmem:[%s6315_s27 + $0x70] sm:$0xff] %vm243_vm1, %v1118_v11 }
 0x16d   : > { %4226 = vst.msk [vmem:[%s6315_s27 + $0xf0] sm:$0xff] %vm243_vm1, %v2038_v13 }
 0x1cc   : > { %v5096_v14 = vpop.f32.mrb[16].mxu0 }
 0x1cd   : > { %v5200_v15 = vpop.f32.mrb[16].mxu1  ;;  %v2947_v16 = vadd.f32 %v5096_v14, %v6310_v12  ;;  %v2851_v18 = vpop.f32.mrb[17].mxu0 }
 0x1ce   : > { %v3868_v17 = vadd.f32 %v5200_v15, %v6310_v12  ;;  %v3772_v19 = vpop.f32.mrb[17].mxu1  ;;  %v2946_v20 = vadd.f32 %v6310_v12, %v2851_v18 }
 0x1cf   : > { %v3867_v21 = vadd.f32 %v6310_v12, %v3772_v19  ;;  %4365 = vst.msk [vmem:[%s6315_s27 + $0x108] sm:$0xff] %vm243_vm1, %v2947_v16 }
 0x1d0   : > { %4517 = vst.msk [vmem:[%s6315_s27 + $0x188] sm:$0xff] %vm243_vm1, %v3868_v17  ;;  %4364 = vst.msk [vmem:[%s6315_s27 + $0x100] sm:$0xff] %vm243_vm1, %v2946_v20  ;;  %v5099_v22 = vpop.f32.mrb[18].mxu0 }
 0x1d1   : > { %4516 = vst.msk [vmem:[%s6315_s27 + $0x180] sm:$0xff] %vm243_vm1, %v3867_v21  ;;  %v5203_v23 = vpop.f32.mrb[18].mxu1  ;;  %v2949_v24 = vadd.f32 %v5099_v22, %v6310_v12  ;;  %v2861_v26 = vpop.f32.mrb[19].mxu0 }
 0x1d2   : > { %v3870_v25 = vadd.f32 %v5203_v23, %v6310_v12  ;;  %v3782_v27 = vpop.f32.mrb[19].mxu1  ;;  %v2948_v28 = vadd.f32 %v6310_v12, %v2861_v26 }
 0x1d3   : > { %v3869_v29 = vadd.f32 %v6310_v12, %v3782_v27  ;;  %4367 = vst.msk [vmem:[%s6315_s27 + $0x118] sm:$0xff] %vm243_vm1, %v2949_v24 }
 0x1d4   : > { %4519 = vst.msk [vmem:[%s6315_s27 + $0x198] sm:$0xff] %vm243_vm1, %v3870_v25  ;;  %4366 = vst.msk [vmem:[%s6315_s27 + $0x110] sm:$0xff] %vm243_vm1, %v2948_v28  ;;  %v5102_v30 = vpop.f32.mrb[20].mxu0 }
 0x1d5   : > { %4518 = vst.msk [vmem:[%s6315_s27 + $0x190] sm:$0xff] %vm243_vm1, %v3869_v29  ;;  %v5206_v31 = vpop.f32.mrb[20].mxu1  ;;  %v2951_v32 = vadd.f32 %v5102_v30, %v6310_v12  ;;  %v2871_v34 = vpop.f32.mrb[21].mxu0 }
 0x1d6   : > { %v3872_v33 = vadd.f32 %v5206_v31, %v6310_v12  ;;  %v3792_v35 = vpop.f32.mrb[21].mxu1  ;;  %v2950_v36 = vadd.f32 %v6310_v12, %v2871_v34 }
 0x1d7   : > { %v3871_v37 = vadd.f32 %v6310_v12, %v3792_v35  ;;  %4369 = vst.msk [vmem:[%s6315_s27 + $0x128] sm:$0xff] %vm243_vm1, %v2951_v32 }
 0x1d8   : > { %4521 = vst.msk [vmem:[%s6315_s27 + $0x1a8] sm:$0xff] %vm243_vm1, %v3872_v33  ;;  %4368 = vst.msk [vmem:[%s6315_s27 + $0x120] sm:$0xff] %vm243_vm1, %v2950_v36  ;;  %v5105_v38 = vpop.f32.mrb[22].mxu0 }
 0x1d9   : > { %4520 = vst.msk [vmem:[%s6315_s27 + $0x1a0] sm:$0xff] %vm243_vm1, %v3871_v37  ;;  %v5209_v39 = vpop.f32.mrb[22].mxu1  ;;  %v2953_v40 = vadd.f32 %v5105_v38, %v6310_v12  ;;  %v2881_v42 = vpop.f32.mrb[23].mxu0 }
 0x1da   : > { %v3874_v41 = vadd.f32 %v5209_v39, %v6310_v12  ;;  %v3802_v43 = vpop.f32.mrb[23].mxu1  ;;  %v2952_v44 = vadd.f32 %v6310_v12, %v2881_v42 }
 0x1db   : > { %v3873_v45 = vadd.f32 %v6310_v12, %v3802_v43  ;;  %4371 = vst.msk [vmem:[%s6315_s27 + $0x138] sm:$0xff] %vm243_vm1, %v2953_v40 }
 0x1dc   : > { %4523 = vst.msk [vmem:[%s6315_s27 + $0x1b8] sm:$0xff] %vm243_vm1, %v3874_v41  ;;  %4370 = vst.msk [vmem:[%s6315_s27 + $0x130] sm:$0xff] %vm243_vm1, %v2952_v44  ;;  %v5108_v46 = vpop.f32.mrb[24].mxu0 }
 0x1dd   : > { %4522 = vst.msk [vmem:[%s6315_s27 + $0x1b0] sm:$0xff] %vm243_vm1, %v3873_v45  ;;  %v5212_v47 = vpop.f32.mrb[24].mxu1  ;;  %v2955_v48 = vadd.f32 %v5108_v46, %v6310_v12  ;;  %v2891_v50 = vpop.f32.mrb[25].mxu0 }
 0x1de   : > { %v3876_v49 = vadd.f32 %v5212_v47, %v6310_v12  ;;  %v3812_v51 = vpop.f32.mrb[25].mxu1  ;;  %v2954_v52 = vadd.f32 %v6310_v12, %v2891_v50 }
 0x1df   : > { %v3875_v53 = vadd.f32 %v6310_v12, %v3812_v51  ;;  %4373 = vst.msk [vmem:[%s6315_s27 + $0x148] sm:$0xff] %vm243_vm1, %v2955_v48 }
 0x1e0   : > { %4525 = vst.msk [vmem:[%s6315_s27 + $0x1c8] sm:$0xff] %vm243_vm1, %v3876_v49  ;;  %4372 = vst.msk [vmem:[%s6315_s27 + $0x140] sm:$0xff] %vm243_vm1, %v2954_v52  ;;  %v5111_v54 = vpop.f32.mrb[26].mxu0 }
 0x1e1   : > { %4524 = vst.msk [vmem:[%s6315_s27 + $0x1c0] sm:$0xff] %vm243_vm1, %v3875_v53  ;;  %v5215_v55 = vpop.f32.mrb[26].mxu1  ;;  %v2957_v56 = vadd.f32 %v5111_v54, %v6310_v12  ;;  %v2901_v58 = vpop.f32.mrb[27].mxu0 }
 0x1e2   : > { %v3878_v57 = vadd.f32 %v5215_v55, %v6310_v12  ;;  %v3822_v59 = vpop.f32.mrb[27].mxu1  ;;  %v2956_v60 = vadd.f32 %v6310_v12, %v2901_v58 }
 0x1e3   : > { %v3877_v61 = vadd.f32 %v6310_v12, %v3822_v59  ;;  %4375 = vst.msk [vmem:[%s6315_s27 + $0x158] sm:$0xff] %vm243_vm1, %v2957_v56 }
 0x1e4   : > { %4527 = vst.msk [vmem:[%s6315_s27 + $0x1d8] sm:$0xff] %vm243_vm1, %v3878_v57  ;;  %4374 = vst.msk [vmem:[%s6315_s27 + $0x150] sm:$0xff] %vm243_vm1, %v2956_v60  ;;  %v5114_v62 = vpop.f32.mrb[28].mxu0 }
 0x1e5   : > { %4526 = vst.msk [vmem:[%s6315_s27 + $0x1d0] sm:$0xff] %vm243_vm1, %v3877_v61  ;;  %v5218_v63 = vpop.f32.mrb[28].mxu1  ;;  %v2959_v0 = vadd.f32 %v5114_v62, %v6310_v12  ;;  %v2911_v2 = vpop.f32.mrb[29].mxu0 }
 0x1e6   : > { %v3880_v1 = vadd.f32 %v5218_v63, %v6310_v12  ;;  %v3832_v3 = vpop.f32.mrb[29].mxu1  ;;  %v2958_v4 = vadd.f32 %v6310_v12, %v2911_v2 }
 0x1e7   : > { %v3879_v5 = vadd.f32 %v6310_v12, %v3832_v3  ;;  %4377 = vst.msk [vmem:[%s6315_s27 + $0x168] sm:$0xff] %vm243_vm1, %v2959_v0 }
 0x1e8   : > { %4529 = vst.msk [vmem:[%s6315_s27 + $0x1e8] sm:$0xff] %vm243_vm1, %v3880_v1  ;;  %4376 = vst.msk [vmem:[%s6315_s27 + $0x160] sm:$0xff] %vm243_vm1, %v2958_v4  ;;  %v5117_v6 = vpop.f32.mrb[30].mxu0 }
 0x1e9   : > { %4528 = vst.msk [vmem:[%s6315_s27 + $0x1e0] sm:$0xff] %vm243_vm1, %v3879_v5  ;;  %v5221_v7 = vpop.f32.mrb[30].mxu1  ;;  %v2961_v8 = vadd.f32 %v5117_v6, %v6310_v12  ;;  %v2921_v10 = vpop.f32.mrb[31].mxu0 }
 0x1ea   : > { %v3882_v9 = vadd.f32 %v5221_v7, %v6310_v12  ;;  %v3842_v11 = vpop.f32.mrb[31].mxu1  ;;  %v2960_v13 = vadd.f32 %v6310_v12, %v2921_v10 }
 0x1eb   : > { %v3881_v14 = vadd.f32 %v6310_v12, %v3842_v11  ;;  %4379 = vst.msk [vmem:[%s6315_s27 + $0x178] sm:$0xff] %vm243_vm1, %v2961_v8 }
 0x1ec   : > { %4531 = vst.msk [vmem:[%s6315_s27 + $0x1f8] sm:$0xff] %vm243_vm1, %v3882_v9  ;;  %4378 = vst.msk [vmem:[%s6315_s27 + $0x170] sm:$0xff] %vm243_vm1, %v2960_v13 }
 0x1ed   : > { %4530 = vst.msk [vmem:[%s6315_s27 + $0x1f0] sm:$0xff] %vm243_vm1, %v3881_v14 }
 0x1ee PF: > { %s13_s16 = sadd.s32 1, %s5494_s16   ;;  %s6528_s12 = smov %s5486_s14 }
 0x1ef   : > { %p10_p7 = scmp.ge.s32.totalorder %s13_s16, 6   ;;  %s6529_s13 = smov %s5490_s15 }
 0x1f0   : > { %s6530_s14 = smov %s6533_s17  ;;  %s6531_s15 = smov %s6537_s18 }
 0x1f1   :  { %12 = sbr.rel (!%p10_p7) target bundleno = 3 (0x3), region = 82 }

</bundles_post_ra>
